<compile_context>
chip_gen: v7x
topology: tpu7x:2x2x1
jax: 0.10.0
libtpu: 0.0.40
codegen_flags: <defaults>
</compile_context>

<pallas_src>
import math

import jax
import jax.numpy as jnp
import numpy as np
from jax.experimental import pallas as pl
from jax.experimental.pallas import tpu as pltpu


def _layernorm(x, gamma, beta, eps=1e-5):
    mu = jnp.mean(x, axis=-1, keepdims=True)
    var = jnp.mean((x - mu) ** 2, axis=-1, keepdims=True)
    return (x - mu) * jax.lax.rsqrt(var + eps) * gamma + beta


# ----------------------------- Pallas kernel --------------------------------
def make_bpgt_kernel(nhead, f_chunk):
    def kernel(x_ref,
               wqkv_ref, bqkv_ref, wo_ref, bo_ref,
               w1_ref, b1_ref, w2_ref, b2_ref,
               g2_ref, be2_ref, g3_ref, be3_ref,
               out_ref, attn_ref, att_acc_ref):
        bb, T, D = x_ref.shape              # Bb batch elements per grid step
        rows = bb * T
        F = w1_ref.shape[1]
        d_k = D // nhead
        inv_sqrt_dk = 1.0 / math.sqrt(d_k)
        bf16 = jnp.bfloat16

        x = x_ref[...].reshape(rows, D)      # (rows, D) f32 (leading-dim merge)
        x_bf = x.astype(bf16)

        # --- fused QKV projection: one MXU matmul with N = 3D ----------------
        qkv = jnp.dot(x_bf, wqkv_ref[...],
                      preferred_element_type=jnp.float32) + bqkv_ref[0]

        # --- attention: per (batch, head); accumulate into VMEM refs ---------
        # (keeps the (T,T) map and the (rows,D) projection accumulator out of
        #  vregs; no lane-concat of heads is ever built)
        attn_ref[...] = jnp.zeros_like(attn_ref)
        att_acc_ref[...] = jnp.zeros_like(att_acc_ref)
        for b in range(bb):                                  # static, small
            r0 = b * T
            for h in range(nhead):                           # static
                c0 = h * d_k
                qh = qkv[r0:r0 + T, c0:c0 + d_k].astype(bf16)
                kh = qkv[r0:r0 + T, D + c0:D + c0 + d_k].astype(bf16)
                vh = qkv[r0:r0 + T, 2 * D + c0:2 * D + c0 + d_k].astype(bf16)

                s = jnp.dot(qh, kh.T,
                            preferred_element_type=jnp.float32) * inv_sqrt_dk
                s = s - jnp.max(s, axis=-1, keepdims=True)
                e = jnp.exp(s)
                p = e * pl.reciprocal(jnp.sum(e, axis=-1, keepdims=True),
                                      approx=True)           # EUP, frees VALU
                attn_ref[b] += p                              # mean-over-heads

                ctx = jnp.dot(p.astype(bf16), vh,
                              preferred_element_type=jnp.float32)
                # output projection folded into the head loop (no concat):
                att_acc_ref[r0:r0 + T, :] += jnp.dot(
                    ctx.astype(bf16), wo_ref[c0:c0 + d_k, :],
                    preferred_element_type=jnp.float32)
        attn_ref[...] = attn_ref[...] * (1.0 / nhead)
        # TODO(synk): attn map could be emitted as bf16 to halve O(T^2) HBM traffic.

        attn_out = att_acc_ref[...] + bo_ref[0]

        # --- residual + LayerNorm (norm2) -------------------------------------
        t = _layernorm(x + attn_out, g2_ref[0], be2_ref[0])
        t_bf = t.astype(bf16)

        # --- feed-forward, tiled over the hidden dim F -------------------------
        nfc = F // f_chunk
        if nfc <= 1:
            h1 = jnp.maximum(
                jnp.dot(t_bf, w1_ref[...],
                        preferred_element_type=jnp.float32) + b1_ref[0], 0.0)
            ff = jnp.dot(h1.astype(bf16), w2_ref[...],
                         preferred_element_type=jnp.float32)
        else:
            def body(c, acc):
                f0 = pl.multiple_of(c * f_chunk, f_chunk)
                h = jnp.maximum(
                    jnp.dot(t_bf, w1_ref[:, pl.ds(f0, f_chunk)],
                            preferred_element_type=jnp.float32)
                    + b1_ref[:, pl.ds(f0, f_chunk)], 0.0)
                return acc + jnp.dot(h.astype(bf16),
                                     w2_ref[pl.ds(f0, f_chunk), :],
                                     preferred_element_type=jnp.float32)
            ff = jax.lax.fori_loop(0, nfc, body,
                                   jnp.zeros((rows, D), jnp.float32))
        ff = ff + b2_ref[0]

        # --- residual + LayerNorm (norm3) -------------------------------------
        out_ref[...] = _layernorm(t + ff, g3_ref[0], be3_ref[0]).reshape(bb, T, D)

    return kernel


# ----------------------------- wrapper ---------------------------------------
def _pick_block_b(B, T, max_rows=512):
    """Fold batches so the MXU M-dim (Bb*T) grows toward 256+, while keeping
    >= 2 grid steps when possible so v7x's two TensorCores both get work."""
    best = 1
    for bb in range(1, B + 1):
        if B % bb:
            continue
        if bb * T > max_rows:
            continue
        if (B // bb) >= 2 or B == 1:
            best = bb
    return best


def _pick_f_chunk(F):
    if F <= 512:
        return F
    for c in (512, 256, 128):
        if F % c == 0:
            return c
    return F


def bpgt_layer_pallas(tgt, params, nhead, *, block_b=None, f_chunk=None):
    """tgt: (tokens, batch, d_model) f32 -> (out (T,B,D) f32, attn (B,T,T) f32)."""
    T, B, D = tgt.shape
    assert D % nhead == 0
    F = params["w1"].shape[1]
    if block_b is None:
        block_b = _pick_block_b(B, T)
    assert B % block_b == 0
    if f_chunk is None:
        f_chunk = _pick_f_chunk(F)
    assert F % f_chunk == 0
    grid = (B // block_b,)

    x = jnp.transpose(tgt, (1, 0, 2))          # (B, T, D)

    # Weight/bias blocks never change across the grid -> single-buffer them.
    def const(shape):
        return pl.BlockSpec(shape, lambda g: (0,) * len(shape),
                            pipeline_mode=pl.Buffered(1))

    in_specs = [
        pl.BlockSpec((block_b, T, D), lambda g: (g, 0, 0)),   # x
        const((D, 3 * D)), const((1, 3 * D)),                 # wqkv, bqkv
        const((D, D)), const((1, D)),                         # wo, bo
        const((D, F)), const((1, F)),                         # w1, b1
        const((F, D)), const((1, D)),                         # w2, b2
        const((1, D)), const((1, D)),                         # gamma2, beta2
        const((1, D)), const((1, D)),                         # gamma3, beta3
    ]

    out, attn = pl.pallas_call(
        make_bpgt_kernel(nhead, f_chunk),
        out_shape=(jax.ShapeDtypeStruct((B, T, D), jnp.float32),
                   jax.ShapeDtypeStruct((B, T, T), jnp.float32)),
        grid_spec=pltpu.PrefetchScalarGridSpec(
            num_scalar_prefetch=0,
            grid=grid,
            in_specs=in_specs,
            out_specs=[pl.BlockSpec((block_b, T, D), lambda g: (g, 0, 0)),
                       pl.BlockSpec((block_b, T, T), lambda g: (g, 0, 0))],
            scratch_shapes=[pltpu.VMEM((block_b * T, D), jnp.float32)]),
        compiler_params=pltpu.CompilerParams(
            dimension_semantics=("parallel",),
            vmem_limit_bytes=48 * 1024 * 1024),
    )(x,
      params["wqkv"], params["bqkv"], params["wo"], params["bo"],
      params["w1"], params["b1"], params["w2"], params["b2"],
      params["g2"], params["be2"], params["g3"], params["be3"])

    return jnp.transpose(out, (1, 0, 2)), attn
    # TODO(synk): tgt_mask (list of additive attention masks) not implemented;
    # only the mask=None path of BPGTLayer.forward is covered.


# -------------------- pure-JAX reference (same bf16 cast points) -------------
def bpgt_layer_ref(tgt, params, nhead):
    T, B, D = tgt.shape
    d_k = D // nhead
    bf = jnp.bfloat16
    x = jnp.transpose(tgt, (1, 0, 2))                        # (B, T, D) f32
    qkv = jnp.einsum("btd,de->bte", x.astype(bf), params["wqkv"],
                     preferred_element_type=jnp.float32) + params["bqkv"][0]
    q, k, v = qkv[..., :D], qkv[..., D:2 * D], qkv[..., 2 * D:]
    qh = q.reshape(B, T, nhead, d_k).transpose(0, 2, 1, 3).astype(bf)
    kh = k.reshape(B, T, nhead, d_k).transpose(0, 2, 1, 3).astype(bf)
    vh = v.reshape(B, T, nhead, d_k).transpose(0, 2, 1, 3).astype(bf)
    s = jnp.einsum("bhqd,bhkd->bhqk", qh, kh,
                   preferred_element_type=jnp.float32) / math.sqrt(d_k)
    p = jax.nn.softmax(s, axis=-1)
    ctx = jnp.einsum("bhqk,bhkd->bhqd", p.astype(bf), vh,
                     preferred_element_type=jnp.float32)
    ctx = ctx.transpose(0, 2, 1, 3).reshape(B, T, D).astype(bf)
    attn_out = jnp.einsum("btd,de->bte", ctx, params["wo"],
                          preferred_element_type=jnp.float32) + params["bo"][0]
    t = _layernorm(x + attn_out, params["g2"][0], params["be2"][0])
    h1 = jnp.maximum(jnp.einsum("btd,df->btf", t.astype(bf), params["w1"],
                                preferred_element_type=jnp.float32)
                     + params["b1"][0], 0.0)
    ff = jnp.einsum("btf,fd->btd", h1.astype(bf), params["w2"],
                    preferred_element_type=jnp.float32) + params["b2"][0]
    out = _layernorm(t + ff, params["g3"][0], params["be3"][0])
    return jnp.transpose(out, (1, 0, 2)), p.mean(axis=1)


def init_params(key, d_model, dim_feedforward):
    # PyTorch nn.Linear default init: U(-1/sqrt(fan_in), 1/sqrt(fan_in)).
    # Weights stored transposed (in, out) so the kernel computes x @ W + b.
    # Matmul weights are stored bf16 (MXU-native); biases / LN params stay f32.
    ks = jax.random.split(key, 12)

    def lin(kw, kb, fin, fout):
        bnd = 1.0 / math.sqrt(fin)
        w = jax.random.uniform(kw, (fin, fout), jnp.float32, -bnd, bnd)
        b = jax.random.uniform(kb, (1, fout), jnp.float32, -bnd, bnd)
        return w, b

    wq, bq = lin(ks[0], ks[1], d_model, d_model)
    wk, bk = lin(ks[2], ks[3], d_model, d_model)
    wv, bv = lin(ks[4], ks[5], d_model, d_model)
    wo, bo = lin(ks[6], ks[7], d_model, d_model)
    w1, b1 = lin(ks[8], ks[9], d_model, dim_feedforward)
    w2, b2 = lin(ks[10], ks[11], dim_feedforward, d_model)
    bf = jnp.bfloat16
    ones = jnp.ones((1, d_model), jnp.float32)
    zeros = jnp.zeros((1, d_model), jnp.float32)
    return dict(
        wqkv=jnp.concatenate([wq, wk, wv], axis=1).astype(bf),
        bqkv=jnp.concatenate([bq, bk, bv], axis=1),
        wo=wo.astype(bf), bo=bo,
        w1=w1.astype(bf), b1=b1,
        w2=w2.astype(bf), b2=b2,
        g2=ones, be2=zeros, g3=ones, be3=zeros)
    # TODO(synk): norm1 and the dropout layers exist in BPGTLayer.__init__ but
    # are unused / identity in the eval-mode forward, so they are omitted.


if __name__ == "__main__":
    def check(tokens, batch, d_model, nhead, dim_ff, f_chunk=None):
        key = jax.random.PRNGKey(0)
        k_x, k_p = jax.random.split(key)
        tgt = jax.random.normal(k_x, (tokens, batch, d_model), jnp.float32)
        params = init_params(k_p, d_model, dim_ff)

        out, attn = bpgt_layer_pallas(tgt, params, nhead, f_chunk=f_chunk)
        jax.block_until_ready((out, attn))

        out_r, attn_r = bpgt_layer_ref(tgt, params, nhead)
        np.testing.assert_allclose(np.asarray(out), np.asarray(out_r),
                                   atol=1e-2, rtol=1e-2)
        np.testing.assert_allclose(np.asarray(attn), np.asarray(attn_r),
                                   atol=2e-3, rtol=2e-3)

    check(8, 2, 32, 4, 64)                 # baseline small config (block_b=1, grid=2)
    check(8, 4, 32, 4, 64)                 # exercises batch blocking (block_b=2)
    check(8, 2, 32, 4, 256, f_chunk=128)   # exercises the F-chunked FFN path
    print("KERNEL_OK")
</pallas_src>

<mosaic_0001>
module attributes {stable_mosaic.version = 11 : i64} {
  func.func @kernel(%arg0: i32, %arg1: memref<1x8x32xf32, #tpu.memory_space<vmem>>, %arg2: memref<32x96xbf16, #tpu.memory_space<vmem>>, %arg3: memref<1x96xf32, #tpu.memory_space<vmem>>, %arg4: memref<32x32xbf16, #tpu.memory_space<vmem>>, %arg5: memref<1x32xf32, #tpu.memory_space<vmem>>, %arg6: memref<32x64xbf16, #tpu.memory_space<vmem>>, %arg7: memref<1x64xf32, #tpu.memory_space<vmem>>, %arg8: memref<64x32xbf16, #tpu.memory_space<vmem>>, %arg9: memref<1x32xf32, #tpu.memory_space<vmem>>, %arg10: memref<1x32xf32, #tpu.memory_space<vmem>>, %arg11: memref<1x32xf32, #tpu.memory_space<vmem>>, %arg12: memref<1x32xf32, #tpu.memory_space<vmem>>, %arg13: memref<1x32xf32, #tpu.memory_space<vmem>>, %arg14: memref<1x8x32xf32, #tpu.memory_space<vmem>>, %arg15: memref<1x8x8xf32, #tpu.memory_space<vmem>>, %arg16: memref<8x32xf32, #tpu.memory_space<vmem>>) attributes {dimension_semantics = [#tpu.dimension_semantics<parallel>], iteration_bounds = array<i64: 2>, scalar_prefetch = 0 : i64, scratch_operands = 1 : i64, tpu.core_type = #tpu.core_type<tc>, window_params = [{transform_indices = @transform_0, window_bounds = array<i64: 1, 8, 32>}, {pipeline_mode = #tpu.pipeline_mode<synchronous>, transform_indices = @transform_1, window_bounds = array<i64: 32, 96>}, {pipeline_mode = #tpu.pipeline_mode<synchronous>, transform_indices = @transform_2, window_bounds = array<i64: 1, 96>}, {pipeline_mode = #tpu.pipeline_mode<synchronous>, transform_indices = @transform_3, window_bounds = array<i64: 32, 32>}, {pipeline_mode = #tpu.pipeline_mode<synchronous>, transform_indices = @transform_4, window_bounds = array<i64: 1, 32>}, {pipeline_mode = #tpu.pipeline_mode<synchronous>, transform_indices = @transform_5, window_bounds = array<i64: 32, 64>}, {pipeline_mode = #tpu.pipeline_mode<synchronous>, transform_indices = @transform_6, window_bounds = array<i64: 1, 64>}, {pipeline_mode = #tpu.pipeline_mode<synchronous>, transform_indices = @transform_7, window_bounds = array<i64: 64, 32>}, {pipeline_mode = #tpu.pipeline_mode<synchronous>, transform_indices = @transform_8, window_bounds = array<i64: 1, 32>}, {pipeline_mode = #tpu.pipeline_mode<synchronous>, transform_indices = @transform_9, window_bounds = array<i64: 1, 32>}, {pipeline_mode = #tpu.pipeline_mode<synchronous>, transform_indices = @transform_10, window_bounds = array<i64: 1, 32>}, {pipeline_mode = #tpu.pipeline_mode<synchronous>, transform_indices = @transform_11, window_bounds = array<i64: 1, 32>}, {pipeline_mode = #tpu.pipeline_mode<synchronous>, transform_indices = @transform_12, window_bounds = array<i64: 1, 32>}, {transform_indices = @transform_13, window_bounds = array<i64: 1, 8, 32>}, {transform_indices = @transform_14, window_bounds = array<i64: 1, 8, 8>}]} {
    %c0 = arith.constant 0 : index
    %c0_0 = arith.constant 0 : index
    %c0_1 = arith.constant 0 : index
    %0 = vector.load %arg1[%c0, %c0_0, %c0_1] : memref<1x8x32xf32, #tpu.memory_space<vmem>>, vector<1x8x32xf32>
    %1 = vector.shape_cast %0 : vector<1x8x32xf32> to vector<8x32xf32>
    %2 = arith.truncf %1 : vector<8x32xf32> to vector<8x32xbf16>
    %c0_2 = arith.constant 0 : index
    %c0_3 = arith.constant 0 : index
    %3 = vector.load %arg2[%c0_2, %c0_3] : memref<32x96xbf16, #tpu.memory_space<vmem>>, vector<32x96xbf16>
    %cst = arith.constant dense<0.000000e+00> : vector<8x96xf32>
    %4 = tpu.matmul %2, %3, %cst {dimension_numbers = #tpu.dot_dimension_numbers<[1], [0], [0], [1], [0, 0, 1, 1], [], []>} : vector<8x32xbf16>, vector<32x96xbf16>, vector<8x96xf32> -> vector<8x96xf32>
    %c0_4 = arith.constant 0 : index
    %c0_5 = arith.constant 0 : index
    %5 = vector.load %arg3[%c0_4, %c0_5] : memref<1x96xf32, #tpu.memory_space<vmem>>, vector<1x96xf32>
    %6 = vector.shape_cast %5 : vector<1x96xf32> to vector<96xf32>
    %7 = vector.shape_cast %6 : vector<96xf32> to vector<1x96xf32>
    %8 = vector.broadcast %7 : vector<1x96xf32> to vector<8x96xf32>
    %9 = arith.addf %4, %8 : vector<8x96xf32>
    %cst_6 = arith.constant 0.000000e+00 : f32
    %10 = vector.broadcast %cst_6 : f32 to vector<1x8x8xf32>
    %c0_7 = arith.constant 0 : index
    %c0_8 = arith.constant 0 : index
    %c0_9 = arith.constant 0 : index
    %11 = vector.load %arg15[%c0_7, %c0_8, %c0_9] : memref<1x8x8xf32, #tpu.memory_space<vmem>>, vector<1x8x8xf32>
    tpu.vector_store %arg15[%c0_7, %c0_8, %c0_9], %10 {strides = array<i32>} : memref<1x8x8xf32, #tpu.memory_space<vmem>>, vector<1x8x8xf32>,
    %cst_10 = arith.constant 0.000000e+00 : f32
    %12 = vector.broadcast %cst_10 : f32 to vector<8x32xf32>
    %c0_11 = arith.constant 0 : index
    %c0_12 = arith.constant 0 : index
    %13 = vector.load %arg16[%c0_11, %c0_12] : memref<8x32xf32, #tpu.memory_space<vmem>>, vector<8x32xf32>
    tpu.vector_store %arg16[%c0_11, %c0_12], %12 {strides = array<i32>} : memref<8x32xf32, #tpu.memory_space<vmem>>, vector<8x32xf32>,
    %14 = vector.extract_strided_slice %9 {offsets = [0, 0], sizes = [8, 8], strides = [1, 1]} : vector<8x96xf32> to vector<8x8xf32>
    %15 = arith.truncf %14 : vector<8x8xf32> to vector<8x8xbf16>
    %16 = vector.extract_strided_slice %9 {offsets = [0, 32], sizes = [8, 8], strides = [1, 1]} : vector<8x96xf32> to vector<8x8xf32>
    %17 = arith.truncf %16 : vector<8x8xf32> to vector<8x8xbf16>
    %18 = vector.extract_strided_slice %9 {offsets = [0, 64], sizes = [8, 8], strides = [1, 1]} : vector<8x96xf32> to vector<8x8xf32>
    %19 = arith.truncf %18 : vector<8x8xf32> to vector<8x8xbf16>
    %20 = tpu.transpose %17, [1, 0] : vector<8x8xbf16> -> vector<8x8xbf16>
    %cst_13 = arith.constant dense<0.000000e+00> : vector<8x8xf32>
    %21 = tpu.matmul %15, %20, %cst_13 {dimension_numbers = #tpu.dot_dimension_numbers<[1], [0], [0], [1], [0, 0, 1, 1], [], []>} : vector<8x8xbf16>, vector<8x8xbf16>, vector<8x8xf32> -> vector<8x8xf32>
    %cst_14 = arith.constant 0.353553385 : f32
    %22 = vector.broadcast %cst_14 : f32 to vector<8x8xf32>
    %23 = arith.mulf %21, %22 : vector<8x8xf32>
    %cst_15 = arith.constant dense<0xFF800000> : vector<8xf32>
    %24 = vector.multi_reduction <maximumf>, %23, %cst_15 [1] : vector<8x8xf32> to vector<8xf32>
    %25 = vector.shape_cast %24 : vector<8xf32> to vector<8x1xf32>
    %26 = vector.broadcast %25 : vector<8x1xf32> to vector<8x8xf32>
    %27 = arith.subf %23, %26 : vector<8x8xf32>
    %28 = math.exp %27 : vector<8x8xf32>
    %cst_16 = arith.constant dense<0.000000e+00> : vector<8xf32>
    %29 = vector.multi_reduction <add>, %28, %cst_16 [1] : vector<8x8xf32> to vector<8xf32>
    %30 = vector.shape_cast %29 : vector<8xf32> to vector<8x1xf32>
    %31 = tpu.reciprocal %30 {approx = true} : vector<8x1xf32> -> vector<8x1xf32>
    %32 = vector.broadcast %31 : vector<8x1xf32> to vector<8x8xf32>
    %33 = arith.mulf %28, %32 : vector<8x8xf32>
    %c0_17 = arith.constant 0 : index
    %c0_18 = arith.constant 0 : index
    %c0_19 = arith.constant 0 : index
    %34 = vector.load %arg15[%c0_17, %c0_18, %c0_19] : memref<1x8x8xf32, #tpu.memory_space<vmem>>, vector<1x8x8xf32>
    %35 = vector.shape_cast %34 : vector<1x8x8xf32> to vector<8x8xf32>
    %36 = arith.addf %35, %33 : vector<8x8xf32>
    %c0_20 = arith.constant 0 : index
    %c0_21 = arith.constant 0 : index
    %c0_22 = arith.constant 0 : index
    %37 = vector.load %arg15[%c0_20, %c0_21, %c0_22] : memref<1x8x8xf32, #tpu.memory_space<vmem>>, vector<1x8x8xf32>
    %38 = vector.shape_cast %37 : vector<1x8x8xf32> to vector<8x8xf32>
    %39 = vector.shape_cast %36 : vector<8x8xf32> to vector<1x8x8xf32>
    tpu.vector_store %arg15[%c0_20, %c0_21, %c0_22], %39 {strides = array<i32>} : memref<1x8x8xf32, #tpu.memory_space<vmem>>, vector<1x8x8xf32>,
    %40 = arith.truncf %33 : vector<8x8xf32> to vector<8x8xbf16>
    %cst_23 = arith.constant dense<0.000000e+00> : vector<8x8xf32>
    %41 = tpu.matmul %40, %19, %cst_23 {dimension_numbers = #tpu.dot_dimension_numbers<[1], [0], [0], [1], [0, 0, 1, 1], [], []>} : vector<8x8xbf16>, vector<8x8xbf16>, vector<8x8xf32> -> vector<8x8xf32>
    %c0_24 = arith.constant 0 : index
    %c0_25 = arith.constant 0 : index
    %42 = vector.load %arg16[%c0_24, %c0_25] : memref<8x32xf32, #tpu.memory_space<vmem>>, vector<8x32xf32>
    %43 = arith.truncf %41 : vector<8x8xf32> to vector<8x8xbf16>
    %c0_26 = arith.constant 0 : index
    %c0_27 = arith.constant 0 : index
    %44 = vector.load %arg4[%c0_26, %c0_27] : memref<32x32xbf16, #tpu.memory_space<vmem>>, vector<8x32xbf16>
    %cst_28 = arith.constant dense<0.000000e+00> : vector<8x32xf32>
    %45 = tpu.matmul %43, %44, %cst_28 {dimension_numbers = #tpu.dot_dimension_numbers<[1], [0], [0], [1], [0, 0, 1, 1], [], []>} : vector<8x8xbf16>, vector<8x32xbf16>, vector<8x32xf32> -> vector<8x32xf32>
    %46 = arith.addf %42, %45 : vector<8x32xf32>
    %c0_29 = arith.constant 0 : index
    %c0_30 = arith.constant 0 : index
    %47 = vector.load %arg16[%c0_29, %c0_30] : memref<8x32xf32, #tpu.memory_space<vmem>>, vector<8x32xf32>
    tpu.vector_store %arg16[%c0_29, %c0_30], %46 {strides = array<i32>} : memref<8x32xf32, #tpu.memory_space<vmem>>, vector<8x32xf32>,
    %48 = vector.extract_strided_slice %9 {offsets = [0, 8], sizes = [8, 8], strides = [1, 1]} : vector<8x96xf32> to vector<8x8xf32>
    %49 = arith.truncf %48 : vector<8x8xf32> to vector<8x8xbf16>
    %50 = vector.extract_strided_slice %9 {offsets = [0, 40], sizes = [8, 8], strides = [1, 1]} : vector<8x96xf32> to vector<8x8xf32>
    %51 = arith.truncf %50 : vector<8x8xf32> to vector<8x8xbf16>
    %52 = vector.extract_strided_slice %9 {offsets = [0, 72], sizes = [8, 8], strides = [1, 1]} : vector<8x96xf32> to vector<8x8xf32>
    %53 = arith.truncf %52 : vector<8x8xf32> to vector<8x8xbf16>
    %54 = tpu.transpose %51, [1, 0] : vector<8x8xbf16> -> vector<8x8xbf16>
    %cst_31 = arith.constant dense<0.000000e+00> : vector<8x8xf32>
    %55 = tpu.matmul %49, %54, %cst_31 {dimension_numbers = #tpu.dot_dimension_numbers<[1], [0], [0], [1], [0, 0, 1, 1], [], []>} : vector<8x8xbf16>, vector<8x8xbf16>, vector<8x8xf32> -> vector<8x8xf32>
    %cst_32 = arith.constant 0.353553385 : f32
    %56 = vector.broadcast %cst_32 : f32 to vector<8x8xf32>
    %57 = arith.mulf %55, %56 : vector<8x8xf32>
    %cst_33 = arith.constant dense<0xFF800000> : vector<8xf32>
    %58 = vector.multi_reduction <maximumf>, %57, %cst_33 [1] : vector<8x8xf32> to vector<8xf32>
    %59 = vector.shape_cast %58 : vector<8xf32> to vector<8x1xf32>
    %60 = vector.broadcast %59 : vector<8x1xf32> to vector<8x8xf32>
    %61 = arith.subf %57, %60 : vector<8x8xf32>
    %62 = math.exp %61 : vector<8x8xf32>
    %cst_34 = arith.constant dense<0.000000e+00> : vector<8xf32>
    %63 = vector.multi_reduction <add>, %62, %cst_34 [1] : vector<8x8xf32> to vector<8xf32>
    %64 = vector.shape_cast %63 : vector<8xf32> to vector<8x1xf32>
    %65 = tpu.reciprocal %64 {approx = true} : vector<8x1xf32> -> vector<8x1xf32>
    %66 = vector.broadcast %65 : vector<8x1xf32> to vector<8x8xf32>
    %67 = arith.mulf %62, %66 : vector<8x8xf32>
    %c0_35 = arith.constant 0 : index
    %c0_36 = arith.constant 0 : index
    %c0_37 = arith.constant 0 : index
    %68 = vector.load %arg15[%c0_35, %c0_36, %c0_37] : memref<1x8x8xf32, #tpu.memory_space<vmem>>, vector<1x8x8xf32>
    %69 = vector.shape_cast %68 : vector<1x8x8xf32> to vector<8x8xf32>
    %70 = arith.addf %69, %67 : vector<8x8xf32>
    %c0_38 = arith.constant 0 : index
    %c0_39 = arith.constant 0 : index
    %c0_40 = arith.constant 0 : index
    %71 = vector.load %arg15[%c0_38, %c0_39, %c0_40] : memref<1x8x8xf32, #tpu.memory_space<vmem>>, vector<1x8x8xf32>
    %72 = vector.shape_cast %71 : vector<1x8x8xf32> to vector<8x8xf32>
    %73 = vector.shape_cast %70 : vector<8x8xf32> to vector<1x8x8xf32>
    tpu.vector_store %arg15[%c0_38, %c0_39, %c0_40], %73 {strides = array<i32>} : memref<1x8x8xf32, #tpu.memory_space<vmem>>, vector<1x8x8xf32>,
    %74 = arith.truncf %67 : vector<8x8xf32> to vector<8x8xbf16>
    %cst_41 = arith.constant dense<0.000000e+00> : vector<8x8xf32>
    %75 = tpu.matmul %74, %53, %cst_41 {dimension_numbers = #tpu.dot_dimension_numbers<[1], [0], [0], [1], [0, 0, 1, 1], [], []>} : vector<8x8xbf16>, vector<8x8xbf16>, vector<8x8xf32> -> vector<8x8xf32>
    %c0_42 = arith.constant 0 : index
    %c0_43 = arith.constant 0 : index
    %76 = vector.load %arg16[%c0_42, %c0_43] : memref<8x32xf32, #tpu.memory_space<vmem>>, vector<8x32xf32>
    %77 = arith.truncf %75 : vector<8x8xf32> to vector<8x8xbf16>
    %c8 = arith.constant 8 : index
    %c0_44 = arith.constant 0 : index
    %78 = vector.load %arg4[%c8, %c0_44] : memref<32x32xbf16, #tpu.memory_space<vmem>>, vector<8x32xbf16>
    %cst_45 = arith.constant dense<0.000000e+00> : vector<8x32xf32>
    %79 = tpu.matmul %77, %78, %cst_45 {dimension_numbers = #tpu.dot_dimension_numbers<[1], [0], [0], [1], [0, 0, 1, 1], [], []>} : vector<8x8xbf16>, vector<8x32xbf16>, vector<8x32xf32> -> vector<8x32xf32>
    %80 = arith.addf %76, %79 : vector<8x32xf32>
    %c0_46 = arith.constant 0 : index
    %c0_47 = arith.constant 0 : index
    %81 = vector.load %arg16[%c0_46, %c0_47] : memref<8x32xf32, #tpu.memory_space<vmem>>, vector<8x32xf32>
    tpu.vector_store %arg16[%c0_46, %c0_47], %80 {strides = array<i32>} : memref<8x32xf32, #tpu.memory_space<vmem>>, vector<8x32xf32>,
    %82 = vector.extract_strided_slice %9 {offsets = [0, 16], sizes = [8, 8], strides = [1, 1]} : vector<8x96xf32> to vector<8x8xf32>
    %83 = arith.truncf %82 : vector<8x8xf32> to vector<8x8xbf16>
    %84 = vector.extract_strided_slice %9 {offsets = [0, 48], sizes = [8, 8], strides = [1, 1]} : vector<8x96xf32> to vector<8x8xf32>
    %85 = arith.truncf %84 : vector<8x8xf32> to vector<8x8xbf16>
    %86 = vector.extract_strided_slice %9 {offsets = [0, 80], sizes = [8, 8], strides = [1, 1]} : vector<8x96xf32> to vector<8x8xf32>
    %87 = arith.truncf %86 : vector<8x8xf32> to vector<8x8xbf16>
    %88 = tpu.transpose %85, [1, 0] : vector<8x8xbf16> -> vector<8x8xbf16>
    %cst_48 = arith.constant dense<0.000000e+00> : vector<8x8xf32>
    %89 = tpu.matmul %83, %88, %cst_48 {dimension_numbers = #tpu.dot_dimension_numbers<[1], [0], [0], [1], [0, 0, 1, 1], [], []>} : vector<8x8xbf16>, vector<8x8xbf16>, vector<8x8xf32> -> vector<8x8xf32>
    %cst_49 = arith.constant 0.353553385 : f32
    %90 = vector.broadcast %cst_49 : f32 to vector<8x8xf32>
    %91 = arith.mulf %89, %90 : vector<8x8xf32>
    %cst_50 = arith.constant dense<0xFF800000> : vector<8xf32>
    %92 = vector.multi_reduction <maximumf>, %91, %cst_50 [1] : vector<8x8xf32> to vector<8xf32>
    %93 = vector.shape_cast %92 : vector<8xf32> to vector<8x1xf32>
    %94 = vector.broadcast %93 : vector<8x1xf32> to vector<8x8xf32>
    %95 = arith.subf %91, %94 : vector<8x8xf32>
    %96 = math.exp %95 : vector<8x8xf32>
    %cst_51 = arith.constant dense<0.000000e+00> : vector<8xf32>
    %97 = vector.multi_reduction <add>, %96, %cst_51 [1] : vector<8x8xf32> to vector<8xf32>
    %98 = vector.shape_cast %97 : vector<8xf32> to vector<8x1xf32>
    %99 = tpu.reciprocal %98 {approx = true} : vector<8x1xf32> -> vector<8x1xf32>
    %100 = vector.broadcast %99 : vector<8x1xf32> to vector<8x8xf32>
    %101 = arith.mulf %96, %100 : vector<8x8xf32>
    %c0_52 = arith.constant 0 : index
    %c0_53 = arith.constant 0 : index
    %c0_54 = arith.constant 0 : index
    %102 = vector.load %arg15[%c0_52, %c0_53, %c0_54] : memref<1x8x8xf32, #tpu.memory_space<vmem>>, vector<1x8x8xf32>
    %103 = vector.shape_cast %102 : vector<1x8x8xf32> to vector<8x8xf32>
    %104 = arith.addf %103, %101 : vector<8x8xf32>
    %c0_55 = arith.constant 0 : index
    %c0_56 = arith.constant 0 : index
    %c0_57 = arith.constant 0 : index
    %105 = vector.load %arg15[%c0_55, %c0_56, %c0_57] : memref<1x8x8xf32, #tpu.memory_space<vmem>>, vector<1x8x8xf32>
    %106 = vector.shape_cast %105 : vector<1x8x8xf32> to vector<8x8xf32>
    %107 = vector.shape_cast %104 : vector<8x8xf32> to vector<1x8x8xf32>
    tpu.vector_store %arg15[%c0_55, %c0_56, %c0_57], %107 {strides = array<i32>} : memref<1x8x8xf32, #tpu.memory_space<vmem>>, vector<1x8x8xf32>,
    %108 = arith.truncf %101 : vector<8x8xf32> to vector<8x8xbf16>
    %cst_58 = arith.constant dense<0.000000e+00> : vector<8x8xf32>
    %109 = tpu.matmul %108, %87, %cst_58 {dimension_numbers = #tpu.dot_dimension_numbers<[1], [0], [0], [1], [0, 0, 1, 1], [], []>} : vector<8x8xbf16>, vector<8x8xbf16>, vector<8x8xf32> -> vector<8x8xf32>
    %c0_59 = arith.constant 0 : index
    %c0_60 = arith.constant 0 : index
    %110 = vector.load %arg16[%c0_59, %c0_60] : memref<8x32xf32, #tpu.memory_space<vmem>>, vector<8x32xf32>
    %111 = arith.truncf %109 : vector<8x8xf32> to vector<8x8xbf16>
    %c16 = arith.constant 16 : index
    %c0_61 = arith.constant 0 : index
    %112 = vector.load %arg4[%c16, %c0_61] : memref<32x32xbf16, #tpu.memory_space<vmem>>, vector<8x32xbf16>
    %cst_62 = arith.constant dense<0.000000e+00> : vector<8x32xf32>
    %113 = tpu.matmul %111, %112, %cst_62 {dimension_numbers = #tpu.dot_dimension_numbers<[1], [0], [0], [1], [0, 0, 1, 1], [], []>} : vector<8x8xbf16>, vector<8x32xbf16>, vector<8x32xf32> -> vector<8x32xf32>
    %114 = arith.addf %110, %113 : vector<8x32xf32>
    %c0_63 = arith.constant 0 : index
    %c0_64 = arith.constant 0 : index
    %115 = vector.load %arg16[%c0_63, %c0_64] : memref<8x32xf32, #tpu.memory_space<vmem>>, vector<8x32xf32>
    tpu.vector_store %arg16[%c0_63, %c0_64], %114 {strides = array<i32>} : memref<8x32xf32, #tpu.memory_space<vmem>>, vector<8x32xf32>,
    %116 = vector.extract_strided_slice %9 {offsets = [0, 24], sizes = [8, 8], strides = [1, 1]} : vector<8x96xf32> to vector<8x8xf32>
    %117 = arith.truncf %116 : vector<8x8xf32> to vector<8x8xbf16>
    %118 = vector.extract_strided_slice %9 {offsets = [0, 56], sizes = [8, 8], strides = [1, 1]} : vector<8x96xf32> to vector<8x8xf32>
    %119 = arith.truncf %118 : vector<8x8xf32> to vector<8x8xbf16>
    %120 = vector.extract_strided_slice %9 {offsets = [0, 88], sizes = [8, 8], strides = [1, 1]} : vector<8x96xf32> to vector<8x8xf32>
    %121 = arith.truncf %120 : vector<8x8xf32> to vector<8x8xbf16>
    %122 = tpu.transpose %119, [1, 0] : vector<8x8xbf16> -> vector<8x8xbf16>
    %cst_65 = arith.constant dense<0.000000e+00> : vector<8x8xf32>
    %123 = tpu.matmul %117, %122, %cst_65 {dimension_numbers = #tpu.dot_dimension_numbers<[1], [0], [0], [1], [0, 0, 1, 1], [], []>} : vector<8x8xbf16>, vector<8x8xbf16>, vector<8x8xf32> -> vector<8x8xf32>
    %cst_66 = arith.constant 0.353553385 : f32
    %124 = vector.broadcast %cst_66 : f32 to vector<8x8xf32>
    %125 = arith.mulf %123, %124 : vector<8x8xf32>
    %cst_67 = arith.constant dense<0xFF800000> : vector<8xf32>
    %126 = vector.multi_reduction <maximumf>, %125, %cst_67 [1] : vector<8x8xf32> to vector<8xf32>
    %127 = vector.shape_cast %126 : vector<8xf32> to vector<8x1xf32>
    %128 = vector.broadcast %127 : vector<8x1xf32> to vector<8x8xf32>
    %129 = arith.subf %125, %128 : vector<8x8xf32>
    %130 = math.exp %129 : vector<8x8xf32>
    %cst_68 = arith.constant dense<0.000000e+00> : vector<8xf32>
    %131 = vector.multi_reduction <add>, %130, %cst_68 [1] : vector<8x8xf32> to vector<8xf32>
    %132 = vector.shape_cast %131 : vector<8xf32> to vector<8x1xf32>
    %133 = tpu.reciprocal %132 {approx = true} : vector<8x1xf32> -> vector<8x1xf32>
    %134 = vector.broadcast %133 : vector<8x1xf32> to vector<8x8xf32>
    %135 = arith.mulf %130, %134 : vector<8x8xf32>
    %c0_69 = arith.constant 0 : index
    %c0_70 = arith.constant 0 : index
    %c0_71 = arith.constant 0 : index
    %136 = vector.load %arg15[%c0_69, %c0_70, %c0_71] : memref<1x8x8xf32, #tpu.memory_space<vmem>>, vector<1x8x8xf32>
    %137 = vector.shape_cast %136 : vector<1x8x8xf32> to vector<8x8xf32>
    %138 = arith.addf %137, %135 : vector<8x8xf32>
    %c0_72 = arith.constant 0 : index
    %c0_73 = arith.constant 0 : index
    %c0_74 = arith.constant 0 : index
    %139 = vector.load %arg15[%c0_72, %c0_73, %c0_74] : memref<1x8x8xf32, #tpu.memory_space<vmem>>, vector<1x8x8xf32>
    %140 = vector.shape_cast %139 : vector<1x8x8xf32> to vector<8x8xf32>
    %141 = vector.shape_cast %138 : vector<8x8xf32> to vector<1x8x8xf32>
    tpu.vector_store %arg15[%c0_72, %c0_73, %c0_74], %141 {strides = array<i32>} : memref<1x8x8xf32, #tpu.memory_space<vmem>>, vector<1x8x8xf32>,
    %142 = arith.truncf %135 : vector<8x8xf32> to vector<8x8xbf16>
    %cst_75 = arith.constant dense<0.000000e+00> : vector<8x8xf32>
    %143 = tpu.matmul %142, %121, %cst_75 {dimension_numbers = #tpu.dot_dimension_numbers<[1], [0], [0], [1], [0, 0, 1, 1], [], []>} : vector<8x8xbf16>, vector<8x8xbf16>, vector<8x8xf32> -> vector<8x8xf32>
    %c0_76 = arith.constant 0 : index
    %c0_77 = arith.constant 0 : index
    %144 = vector.load %arg16[%c0_76, %c0_77] : memref<8x32xf32, #tpu.memory_space<vmem>>, vector<8x32xf32>
    %145 = arith.truncf %143 : vector<8x8xf32> to vector<8x8xbf16>
    %c24 = arith.constant 24 : index
    %c0_78 = arith.constant 0 : index
    %146 = vector.load %arg4[%c24, %c0_78] : memref<32x32xbf16, #tpu.memory_space<vmem>>, vector<8x32xbf16>
    %cst_79 = arith.constant dense<0.000000e+00> : vector<8x32xf32>
    %147 = tpu.matmul %145, %146, %cst_79 {dimension_numbers = #tpu.dot_dimension_numbers<[1], [0], [0], [1], [0, 0, 1, 1], [], []>} : vector<8x8xbf16>, vector<8x32xbf16>, vector<8x32xf32> -> vector<8x32xf32>
    %148 = arith.addf %144, %147 : vector<8x32xf32>
    %c0_80 = arith.constant 0 : index
    %c0_81 = arith.constant 0 : index
    %149 = vector.load %arg16[%c0_80, %c0_81] : memref<8x32xf32, #tpu.memory_space<vmem>>, vector<8x32xf32>
    tpu.vector_store %arg16[%c0_80, %c0_81], %148 {strides = array<i32>} : memref<8x32xf32, #tpu.memory_space<vmem>>, vector<8x32xf32>,
    %c0_82 = arith.constant 0 : index
    %c0_83 = arith.constant 0 : index
    %c0_84 = arith.constant 0 : index
    %150 = vector.load %arg15[%c0_82, %c0_83, %c0_84] : memref<1x8x8xf32, #tpu.memory_space<vmem>>, vector<1x8x8xf32>
    %cst_85 = arith.constant 2.500000e-01 : f32
    %151 = vector.broadcast %cst_85 : f32 to vector<1x8x8xf32>
    %152 = arith.mulf %150, %151 : vector<1x8x8xf32>
    %c0_86 = arith.constant 0 : index
    %c0_87 = arith.constant 0 : index
    %c0_88 = arith.constant 0 : index
    %153 = vector.load %arg15[%c0_86, %c0_87, %c0_88] : memref<1x8x8xf32, #tpu.memory_space<vmem>>, vector<1x8x8xf32>
    tpu.vector_store %arg15[%c0_86, %c0_87, %c0_88], %152 {strides = array<i32>} : memref<1x8x8xf32, #tpu.memory_space<vmem>>, vector<1x8x8xf32>,
    %c0_89 = arith.constant 0 : index
    %c0_90 = arith.constant 0 : index
    %154 = vector.load %arg16[%c0_89, %c0_90] : memref<8x32xf32, #tpu.memory_space<vmem>>, vector<8x32xf32>
    %c0_91 = arith.constant 0 : index
    %c0_92 = arith.constant 0 : index
    %155 = vector.load %arg5[%c0_91, %c0_92] : memref<1x32xf32, #tpu.memory_space<vmem>>, vector<1x32xf32>
    %156 = vector.shape_cast %155 : vector<1x32xf32> to vector<32xf32>
    %157 = vector.shape_cast %156 : vector<32xf32> to vector<1x32xf32>
    %158 = vector.broadcast %157 : vector<1x32xf32> to vector<8x32xf32>
    %159 = arith.addf %154, %158 : vector<8x32xf32>
    %160 = arith.addf %1, %159 : vector<8x32xf32>
    %c0_93 = arith.constant 0 : index
    %c0_94 = arith.constant 0 : index
    %161 = vector.load %arg10[%c0_93, %c0_94] : memref<1x32xf32, #tpu.memory_space<vmem>>, vector<1x32xf32>
    %162 = vector.shape_cast %161 : vector<1x32xf32> to vector<32xf32>
    %c0_95 = arith.constant 0 : index
    %c0_96 = arith.constant 0 : index
    %163 = vector.load %arg11[%c0_95, %c0_96] : memref<1x32xf32, #tpu.memory_space<vmem>>, vector<1x32xf32>
    %164 = vector.shape_cast %163 : vector<1x32xf32> to vector<32xf32>
    %cst_97 = arith.constant dense<0.000000e+00> : vector<8xf32>
    %165 = vector.multi_reduction <add>, %160, %cst_97 [1] : vector<8x32xf32> to vector<8xf32>
    %166 = vector.shape_cast %165 : vector<8xf32> to vector<8x1xf32>
    %cst_98 = arith.constant 3.200000e+01 : f32
    %167 = vector.broadcast %cst_98 : f32 to vector<8x1xf32>
    %168 = arith.divf %166, %167 : vector<8x1xf32>
    %169 = vector.broadcast %168 : vector<8x1xf32> to vector<8x32xf32>
    %170 = arith.subf %160, %169 : vector<8x32xf32>
    %171 = arith.mulf %170, %170 : vector<8x32xf32>
    %cst_99 = arith.constant dense<0.000000e+00> : vector<8xf32>
    %172 = vector.multi_reduction <add>, %171, %cst_99 [1] : vector<8x32xf32> to vector<8xf32>
    %173 = vector.shape_cast %172 : vector<8xf32> to vector<8x1xf32>
    %cst_100 = arith.constant 3.200000e+01 : f32
    %174 = vector.broadcast %cst_100 : f32 to vector<8x1xf32>
    %175 = arith.divf %173, %174 : vector<8x1xf32>
    %176 = vector.broadcast %168 : vector<8x1xf32> to vector<8x32xf32>
    %177 = arith.subf %160, %176 : vector<8x32xf32>
    %cst_101 = arith.constant 9.99999974E-6 : f32
    %178 = vector.broadcast %cst_101 : f32 to vector<8x1xf32>
    %179 = arith.addf %175, %178 : vector<8x1xf32>
    %180 = math.rsqrt %179 : vector<8x1xf32>
    %181 = vector.broadcast %180 : vector<8x1xf32> to vector<8x32xf32>
    %182 = arith.mulf %177, %181 : vector<8x32xf32>
    %183 = vector.shape_cast %162 : vector<32xf32> to vector<1x32xf32>
    %184 = vector.broadcast %183 : vector<1x32xf32> to vector<8x32xf32>
    %185 = arith.mulf %182, %184 : vector<8x32xf32>
    %186 = vector.shape_cast %164 : vector<32xf32> to vector<1x32xf32>
    %187 = vector.broadcast %186 : vector<1x32xf32> to vector<8x32xf32>
    %188 = arith.addf %185, %187 : vector<8x32xf32>
    %189 = arith.truncf %188 : vector<8x32xf32> to vector<8x32xbf16>
    %c0_102 = arith.constant 0 : index
    %c0_103 = arith.constant 0 : index
    %190 = vector.load %arg6[%c0_102, %c0_103] : memref<32x64xbf16, #tpu.memory_space<vmem>>, vector<32x64xbf16>
    %cst_104 = arith.constant dense<0.000000e+00> : vector<8x64xf32>
    %191 = tpu.matmul %189, %190, %cst_104 {dimension_numbers = #tpu.dot_dimension_numbers<[1], [0], [0], [1], [0, 0, 1, 1], [], []>} : vector<8x32xbf16>, vector<32x64xbf16>, vector<8x64xf32> -> vector<8x64xf32>
    %c0_105 = arith.constant 0 : index
    %c0_106 = arith.constant 0 : index
    %192 = vector.load %arg7[%c0_105, %c0_106] : memref<1x64xf32, #tpu.memory_space<vmem>>, vector<1x64xf32>
    %193 = vector.shape_cast %192 : vector<1x64xf32> to vector<64xf32>
    %194 = vector.shape_cast %193 : vector<64xf32> to vector<1x64xf32>
    %195 = vector.broadcast %194 : vector<1x64xf32> to vector<8x64xf32>
    %196 = arith.addf %191, %195 : vector<8x64xf32>
    %cst_107 = arith.constant 0.000000e+00 : f32
    %197 = vector.broadcast %cst_107 : f32 to vector<8x64xf32>
    %198 = arith.maximumf %196, %197 : vector<8x64xf32>
    %199 = arith.truncf %198 : vector<8x64xf32> to vector<8x64xbf16>
    %c0_108 = arith.constant 0 : index
    %c0_109 = arith.constant 0 : index
    %200 = vector.load %arg8[%c0_108, %c0_109] : memref<64x32xbf16, #tpu.memory_space<vmem>>, vector<64x32xbf16>
    %cst_110 = arith.constant dense<0.000000e+00> : vector<8x32xf32>
    %201 = tpu.matmul %199, %200, %cst_110 {dimension_numbers = #tpu.dot_dimension_numbers<[1], [0], [0], [1], [0, 0, 1, 1], [], []>} : vector<8x64xbf16>, vector<64x32xbf16>, vector<8x32xf32> -> vector<8x32xf32>
    %c0_111 = arith.constant 0 : index
    %c0_112 = arith.constant 0 : index
    %202 = vector.load %arg9[%c0_111, %c0_112] : memref<1x32xf32, #tpu.memory_space<vmem>>, vector<1x32xf32>
    %203 = vector.shape_cast %202 : vector<1x32xf32> to vector<32xf32>
    %204 = vector.shape_cast %203 : vector<32xf32> to vector<1x32xf32>
    %205 = vector.broadcast %204 : vector<1x32xf32> to vector<8x32xf32>
    %206 = arith.addf %201, %205 : vector<8x32xf32>
    %207 = arith.addf %188, %206 : vector<8x32xf32>
    %c0_113 = arith.constant 0 : index
    %c0_114 = arith.constant 0 : index
    %208 = vector.load %arg12[%c0_113, %c0_114] : memref<1x32xf32, #tpu.memory_space<vmem>>, vector<1x32xf32>
    %209 = vector.shape_cast %208 : vector<1x32xf32> to vector<32xf32>
    %c0_115 = arith.constant 0 : index
    %c0_116 = arith.constant 0 : index
    %210 = vector.load %arg13[%c0_115, %c0_116] : memref<1x32xf32, #tpu.memory_space<vmem>>, vector<1x32xf32>
    %211 = vector.shape_cast %210 : vector<1x32xf32> to vector<32xf32>
    %cst_117 = arith.constant dense<0.000000e+00> : vector<8xf32>
    %212 = vector.multi_reduction <add>, %207, %cst_117 [1] : vector<8x32xf32> to vector<8xf32>
    %213 = vector.shape_cast %212 : vector<8xf32> to vector<8x1xf32>
    %cst_118 = arith.constant 3.200000e+01 : f32
    %214 = vector.broadcast %cst_118 : f32 to vector<8x1xf32>
    %215 = arith.divf %213, %214 : vector<8x1xf32>
    %216 = vector.broadcast %215 : vector<8x1xf32> to vector<8x32xf32>
    %217 = arith.subf %207, %216 : vector<8x32xf32>
    %218 = arith.mulf %217, %217 : vector<8x32xf32>
    %cst_119 = arith.constant dense<0.000000e+00> : vector<8xf32>
    %219 = vector.multi_reduction <add>, %218, %cst_119 [1] : vector<8x32xf32> to vector<8xf32>
    %220 = vector.shape_cast %219 : vector<8xf32> to vector<8x1xf32>
    %cst_120 = arith.constant 3.200000e+01 : f32
    %221 = vector.broadcast %cst_120 : f32 to vector<8x1xf32>
    %222 = arith.divf %220, %221 : vector<8x1xf32>
    %223 = vector.broadcast %215 : vector<8x1xf32> to vector<8x32xf32>
    %224 = arith.subf %207, %223 : vector<8x32xf32>
    %cst_121 = arith.constant 9.99999974E-6 : f32
    %225 = vector.broadcast %cst_121 : f32 to vector<8x1xf32>
    %226 = arith.addf %222, %225 : vector<8x1xf32>
    %227 = math.rsqrt %226 : vector<8x1xf32>
    %228 = vector.broadcast %227 : vector<8x1xf32> to vector<8x32xf32>
    %229 = arith.mulf %224, %228 : vector<8x32xf32>
    %230 = vector.shape_cast %209 : vector<32xf32> to vector<1x32xf32>
    %231 = vector.broadcast %230 : vector<1x32xf32> to vector<8x32xf32>
    %232 = arith.mulf %229, %231 : vector<8x32xf32>
    %233 = vector.shape_cast %211 : vector<32xf32> to vector<1x32xf32>
    %234 = vector.broadcast %233 : vector<1x32xf32> to vector<8x32xf32>
    %235 = arith.addf %232, %234 : vector<8x32xf32>
    %236 = vector.shape_cast %235 : vector<8x32xf32> to vector<1x8x32xf32>
    %c0_122 = arith.constant 0 : index
    %c0_123 = arith.constant 0 : index
    %c0_124 = arith.constant 0 : index
    %237 = vector.load %arg14[%c0_122, %c0_123, %c0_124] : memref<1x8x32xf32, #tpu.memory_space<vmem>>, vector<1x8x32xf32>
    tpu.vector_store %arg14[%c0_122, %c0_123, %c0_124], %236 {strides = array<i32>} : memref<1x8x32xf32, #tpu.memory_space<vmem>>, vector<1x8x32xf32>,
    return
  }
  func.func @transform_0(%arg0: i32) -> (i32, i32, i32) {
    %c0_i32 = arith.constant 0 : i32
    %c0_i32_0 = arith.constant 0 : i32
    %c0_i32_1 = arith.constant 0 : i32
    return %arg0, %c0_i32, %c0_i32_0 : i32, i32, i32
  }
  func.func @transform_1(%arg0: i32) -> (i32, i32) {
    %c0_i32 = arith.constant 0 : i32
    %c0_i32_0 = arith.constant 0 : i32
    %c0_i32_1 = arith.constant 0 : i32
    return %c0_i32, %c0_i32_0 : i32, i32
  }
  func.func @transform_2(%arg0: i32) -> (i32, i32) {
    %c0_i32 = arith.constant 0 : i32
    %c0_i32_0 = arith.constant 0 : i32
    %c0_i32_1 = arith.constant 0 : i32
    return %c0_i32, %c0_i32_0 : i32, i32
  }
  func.func @transform_3(%arg0: i32) -> (i32, i32) {
    %c0_i32 = arith.constant 0 : i32
    %c0_i32_0 = arith.constant 0 : i32
    %c0_i32_1 = arith.constant 0 : i32
    return %c0_i32, %c0_i32_0 : i32, i32
  }
  func.func @transform_4(%arg0: i32) -> (i32, i32) {
    %c0_i32 = arith.constant 0 : i32
    %c0_i32_0 = arith.constant 0 : i32
    %c0_i32_1 = arith.constant 0 : i32
    return %c0_i32, %c0_i32_0 : i32, i32
  }
  func.func @transform_5(%arg0: i32) -> (i32, i32) {
    %c0_i32 = arith.constant 0 : i32
    %c0_i32_0 = arith.constant 0 : i32
    %c0_i32_1 = arith.constant 0 : i32
    return %c0_i32, %c0_i32_0 : i32, i32
  }
  func.func @transform_6(%arg0: i32) -> (i32, i32) {
    %c0_i32 = arith.constant 0 : i32
    %c0_i32_0 = arith.constant 0 : i32
    %c0_i32_1 = arith.constant 0 : i32
    return %c0_i32, %c0_i32_0 : i32, i32
  }
  func.func @transform_7(%arg0: i32) -> (i32, i32) {
    %c0_i32 = arith.constant 0 : i32
    %c0_i32_0 = arith.constant 0 : i32
    %c0_i32_1 = arith.constant 0 : i32
    return %c0_i32, %c0_i32_0 : i32, i32
  }
  func.func @transform_8(%arg0: i32) -> (i32, i32) {
    %c0_i32 = arith.constant 0 : i32
    %c0_i32_0 = arith.constant 0 : i32
    %c0_i32_1 = arith.constant 0 : i32
    return %c0_i32, %c0_i32_0 : i32, i32
  }
  func.func @transform_9(%arg0: i32) -> (i32, i32) {
    %c0_i32 = arith.constant 0 : i32
    %c0_i32_0 = arith.constant 0 : i32
    %c0_i32_1 = arith.constant 0 : i32
    return %c0_i32, %c0_i32_0 : i32, i32
  }
  func.func @transform_10(%arg0: i32) -> (i32, i32) {
    %c0_i32 = arith.constant 0 : i32
    %c0_i32_0 = arith.constant 0 : i32
    %c0_i32_1 = arith.constant 0 : i32
    return %c0_i32, %c0_i32_0 : i32, i32
  }
  func.func @transform_11(%arg0: i32) -> (i32, i32) {
    %c0_i32 = arith.constant 0 : i32
    %c0_i32_0 = arith.constant 0 : i32
    %c0_i32_1 = arith.constant 0 : i32
    return %c0_i32, %c0_i32_0 : i32, i32
  }
  func.func @transform_12(%arg0: i32) -> (i32, i32) {
    %c0_i32 = arith.constant 0 : i32
    %c0_i32_0 = arith.constant 0 : i32
    %c0_i32_1 = arith.constant 0 : i32
    return %c0_i32, %c0_i32_0 : i32, i32
  }
  func.func @transform_13(%arg0: i32) -> (i32, i32, i32) {
    %c0_i32 = arith.constant 0 : i32
    %c0_i32_0 = arith.constant 0 : i32
    %c0_i32_1 = arith.constant 0 : i32
    return %arg0, %c0_i32, %c0_i32_0 : i32, i32, i32
  }
  func.func @transform_14(%arg0: i32) -> (i32, i32, i32) {
    %c0_i32 = arith.constant 0 : i32
    %c0_i32_0 = arith.constant 0 : i32
    %c0_i32_1 = arith.constant 0 : i32
    return %arg0, %c0_i32, %c0_i32_0 : i32, i32, i32
  }
}

</mosaic_0001>

<bundles_post_ra>
// kernel: tpu_custom_call.1
= control target key start
LH: loop header
LB: loop body
LE: loop exit
PB: predicated region body
PF: predicated region fallthrough
CT: control target
= control target key end

     0   :  { %s2443_s0 = inlined_call_operand.vmem [shape: f32[2,8,32], index: 0, kind: input, shape index: {}]   ;;  %s2444_s1 = inlined_call_operand.vmem [shape: bf16[32,96], index: 1, kind: input, shape index: {}]   ;;  %s2445_s2 = inlined_call_operand.vmem [shape: f32[1,96], index: 2, kind: input, shape index: {}]   ;;  %s2446_s3 = inlined_call_operand.vmem [shape: bf16[32,32], index: 3, kind: input, shape index: {}]   ;;  %s2447_s4 = inlined_call_operand.vmem [shape: f32[1,32], index: 4, kind: input, shape index: {}]   ;;  %s2448_s5 = inlined_call_operand.hbm [shape: bf16[32,64], index: 5, kind: input, shape index: {}]   ;;  %s2449_s6 = inlined_call_operand.vmem [shape: f32[1,64], index: 6, kind: input, shape index: {}]   ;;  %s2450_s7 = inlined_call_operand.vmem [shape: bf16[64,32], index: 7, kind: input, shape index: {}]   ;;  %s2451_s8 = inlined_call_operand.vmem [shape: f32[1,32], index: 8, kind: input, shape index: {}]   ;;  %s2452_s9 = inlined_call_operand.vmem [shape: f32[1,32], index: 9, kind: input, shape index: {}]   ;;  %s2453_s10 = inlined_call_operand.vmem [shape: f32[1,32], index: 10, kind: input, shape index: {}]   ;;  %s2454_s11 = inlined_call_operand.vmem [shape: f32[1,32], index: 11, kind: input, shape index: {}]   ;;  %s2455_s12 = inlined_call_operand.vmem [shape: f32[1,32], index: 12, kind: input, shape index: {}]   ;;  %s2456_s13 = inlined_call_operand.hbm [shape: f32[2,8,32], index: 13, kind: output, shape index: {0}]   ;;  %s2457_s14 = inlined_call_operand.hbm [shape: f32[2,8,8], index: 14, kind: output, shape index: {1}]  }
   0x1   :  { %2467 = sst [smem:[#allocation16_spill]] %s2443_s0 }
   0x2   :  { %20 = vsyncpa [#allocation4], 0 }
   0x3   :  { %21 = vsyncpa [#allocation5], 0 }
   0x4   :  { %23 = vsyncpa [#allocation5 + $0x1], 0 }
   0x5   :  { %24 = vsyncpa [#allocation8], 0 }
   0x6   :  { %26 = vsyncpa [#allocation8 + $0x1], 0  ;;  %s2084_s29 = smov 0   ;;  %s2086_s30 = smov 0  }
   0x7   :  { %s2088_s15 = smov 0   ;;  %s2090_s16 = smov 0  }
   0x8 LB: > { %2468 = sst [smem:[#allocation12_spill]] %s1985_s15  ;;  %s2105_s17 = sadd.s32 4294967295, %s1989_s16   ;;  %s1989_s16 = sphi %s2090_s16, %s2485_s16   ;;  %s1985_s15 = sphi %s2088_s15, %s2487_s15   ;;  %s1981_s30 = sphi %s2086_s30, %s2489_s30   ;;  %s1977_s29 = sphi %s2084_s29, %s2488_s29  }
   0x9   : > { %s1584_s18 = sadd.s32 4294967294, %s1989_s16   ;;  %s2109_s19 = sadd.s32 1, %s1989_s16  }
   0xa   : > { %2469 = sst [smem:[#allocation13_spill]] %s2109_s19  ;;  %s317_s20 = sadd.s32 1, %s1985_s15 }
   0xb   : > { %s314_s21 = ssub.s32 %s1989_s16, %s2109_s19  ;;  %p327_p0 = scmp.ne.s32.totalorder %s1985_s15, %s1981_s30 }
   0xc   : > { %p315_p1 = scmp.eq.s32.totalorder %s314_s21, 0  ;;  %p328_p2 = scmp.eq.s32.totalorder %s2105_s17, 1 }
   0xd   : > { %p333_p3 = scmp.ne.s32.totalorder %s1981_s30, %s1977_s29  ;;  %p334_p4 = scmp.eq.s32.totalorder %s1584_s18, 1 }
   0xe   : > { %s2120_s22 = scalar_select %p315_p1, %s1985_s15, %s317_s20  }
   0xf   : > { %p2122_p5 = por %p328_p2, %p327_p0  ;;  %p2126_p6 = por %p334_p4, %p333_p3 }
  0x10   : > { %2470 = sst [smem:[#allocation14_spill]] %s2120_s22  ;;  %p1585_p7 = scmp.ge.s32.totalorder %s1989_s16, 1 }
  0x11   : > { %s2471_s23 = scalar_select %p2122_p5, 1, 0 }
  0x12   : > { %s2472_s24 = scalar_select %p2126_p6, 1, 0 }
  0x13   : > { %p367_p8 = scmp.lt.s32.totalorder %s1989_s16, 3  ;;  %p2462_p9 = scmp.eq.s32.totalorder %s2105_s17, 0 }
  0x14   : > { %2473 = sst [smem:[#allocation15_spill]] %s2472_s24  ;;  %s1991_s26 = smov [#allocation3]  }
  0x15   : > { %p2133_p10 = pnand %p1585_p7, %p367_p8  ;;  %s391_s27 = sshll.u32 %s1991_s26, 4  ;;  %s392_s27 = int_to_ptr.vmem [resolvable:$true] %s391_s27 }
  0x16   : > { %s1863_s21 = scalar_lea.hbm %s2448_s5, 256 }
  0x17   : > { %s2474_s25 = scalar_select %p2133_p10, 1, 0 }
  0x18   : > { %p1773_p11 = pneg %p2133_p10  ;;  %p1864_p13 = scmp.ne.s32.totalorder %s2448_s5, %s1863_s21 }
  0x19   : > { %p1870_p3 = scmp.lt.u32.totalorder %s1863_s21, %s2448_s5 }
  0x1a   : > { %p2141_p12 = pnand %p2462_p9, %p1773_p11 }
  0x1c   : > { %p1865_p0 = pneg %p2141_p12 }
  0x1e   : > { %p1866_p1 = pnand %p1865_p0, %p1864_p13 }
  0x20   : > { %p1867_p2 = pneg %p1866_p1 }
  0x22   : > { %p1872_p4 = pnand %p1870_p3, %p1867_p2 }
  0x24   : > { %1875 = shalt.err (!%p1872_p4)
}
  0x25   : > { %s1876_s24 = scalar_lea.vmem %s392_s27, 256  ;;  %p1884_p9 = scmp.lt.s32.totalorder %s392_s27, %s392_s27 }
  0x26   : > { %p1877_p7 = scmp.ne.s32.totalorder %s392_s27, %s1876_s24  ;;  %p1885_p6 = scmp.lt.s32.totalorder %s1876_s24, %s1876_s24 }
  0x28   : > { %p1879_p8 = pnand %p1877_p7, %p1865_p0  ;;  %p1886_p5 = por %p1885_p6, %p1884_p9 }
  0x2a   : > { %p1880_p11 = pneg %p1879_p8 }
  0x2c   : > { %p1887_p10 = pnand %p1886_p5, %p1880_p11 }
  0x2e   : > { %1890 = shalt.err (!%p1887_p10)
}
  0x2f   : > { %s1992_s15 = smov 64   ;;  %s1993_s22 = smov 4  }
  0x30   : > { %1776 = dma.hbm_to_vmem [thread:$0]  (!%p2141_p12), %s2448_s5, 256, %s392_s27, [#allocation4], %s1992_s15, %s1992_s15, %s1993_s22  }
  0x31   : > { %p2476_p13 = scmp.ne.s32.totalorder %s2474_s25, 0 }
  0x32   : > { %p2477_p1 = scmp.eq.s32.totalorder (!%p2476_p13), %s2105_s17, 0 }
  0x33   : > { %435 = sbr.rel (%p2476_p13) target bundleno = 4068 (0xfe4), region = 72 }
  0x3a   : > { %1964 = dma.done.wait (%p2477_p1), [#allocation4], 256   ;;  %p2478_p0 = pmov %p2477_p1 }
  0x3b   : > { %p485_p5 = scmp.lt.s32.totalorder %s2105_s17, 1  ;;  %vm515_vm0 = vcmask 261120   ;;  %v1994_v0 = vmov 0.0   ;;  %vm1995_vm1 = vmmov 0   ;;  %s2479_s0 = sld [smem:[#allocation16_spill]]  ;;  %v1835_v1 = vld [vmem:[%s2444_s1] sm:$0xff]  }
  0x3c   : > { %1966 = vsyncadd (%p2478_p0), [#allocation4], 4294967040  ;;  %1665 = vmatprep.subr.bf16.mxu1 %v1994_v0  ;;  %1669 = vmatprep.mubr.msk.bf16.mxu1 %vm1995_vm1, %v1994_v0  ;;  %561 = vst.msk [vmem:[#allocation2] sm:$0xff] %vm515_vm0, %v1994_v0  ;;  %v1836_v2 = vld [vmem:[%s2444_s1 + $0x8] sm:$0xff]   ;;  %v1593_v5 = vld [vmem:[%s2445_s2] ss:$0 sm:$0xff] }
  0x3d   : > { %s486_s19 = scalar_select %p485_p5, %s2105_s17, 1  ;;  %1679 = vmatprep.subr.bf16.mxu0 %v1994_v0  ;;  %1681 = vmatprep.mubr.msk.bf16.mxu0 %vm1995_vm1, %v1994_v0  ;;  %vm559_vm2 = vcmask 64512   ;;  %vm633_vm3 = vcmask 1043456   ;;  %v679_v27 = vld [vmem:[%s2446_s3] sm:$0xf]  ;;  %vm1374_vm4 = vcmask 523264  }
  0x3e   : > { %1666 = vmatpush3.bf16.msra.mxu1 %v1835_v1  ;;  %s1998_s25 = smov 56   ;;  %s1999_s27 = smov 88   ;;  %v684_v28 = vsel %vm633_vm3, %v679_v27, 0 }
  0x3f   : > { %s1592_s24 = sshll.u32 %s486_s19, 3  ;;  %1667 = vmatprep.subr.bf16.mxu1 %v1994_v0  ;;  %s1996_s19 = smov 64  }
  0x40   : > { %s2000_s15 = smov 120   ;;  %s2001_s20 = smov 80  }
  0x41   : > { %s488_s28 = scalar_lea.vmem %s2479_s0, %s1592_s24  ;;  %s1997_s24 = smov 96  }
  0x42   : > { %v2186_v3 = vld [vmem:[%s488_s28] sm:$0xff]  ;;  %1668 = vmatpush3.bf16.msra.mxu1 %v1836_v2  ;;  %s2215_s28 = sand.u32 1, %s1981_s30   ;;  %s2005_s22 = smov 104  }
  0x43   : > { %v491_v4 = vpack.c.bf16 %v2186_v3, %v2186_v3  ;;  %1673 = vmatprep.subr.bf16.mxu1 %v1994_v0  ;;  %s2465_s21 = sshll.u32 %s2215_s28, 3  ;;  %v677_v56 = vld [vmem:[#allocation2] sm:$0xff]  ;;  %p2480_p9 = scmp.ne.s32.totalorder %s2471_s23, 0 }
  0x44   : > { %s2220_s26 = scalar_lea.vmem [#allocation7], %s2465_s21 }
  0x45   : > { %1670 = vmatmul.mubr.msk.bf16.vlgmr.msra.gmra.mrb[0].mxu1 %vm515_vm0, %v491_v4  ;;  %560 = vst.msk [vmem:[%s2220_s26] sm:$0xff] %vm559_vm2, %v1994_v0 }
  0x46   : > { %1675 = vmatprep.mubr.msk.bf16.mxu1 %vm1995_vm1, %v1994_v0 }
  0x4c   : > { %v624_v31 = vld [vmem:[%s2220_s26] sm:$0xff] }
 0x118   : > { %v553_v6 = vpop.f32.mrb[0].mxu1 }
 0x119   : > { %v554_v7 = vadd.f32 %v1593_v5, %v553_v6  ;;  %v1671_v8 = vpop.f32.mrb[1].mxu1 }
 0x11a   : > { %v556_v9 = vpop.f32.mrb[2].mxu1 }
 0x11b   : > { %v2198_v10 = vpack.c.bf16 %v554_v7, %v554_v7  ;;  %v1672_v11 = vpop.f32.mrb[3].mxu1  ;;  %v844_v9 = vld [vmem:[%s2446_s3 + $0x4] sm:$0xf] }
 0x11c   : > { %v849_v11 = vsel %vm633_vm3, %v844_v9, 0 }
 0x11d   : > { %628 = vrot.lane.b32.xlu1 %v2198_v10, %s1996_s19  ;;  %564 = vrot.lane.b32.xlu0 %v2198_v10, %s1997_s24  ;;  %s2002_s19 = smov 112   ;;  %s1481_s24 = sshll.u32 %s2220_s26, 4  ;;  %s1482_s24 = int_to_ptr.vmem [resolvable:$true] %s1481_s24 }
 0x18f   : > { %v629_v12 = vpop.permute.xlu1 %628  ;;  %v565_v13 = vpop.permute.xlu0 %564 }
 0x190   : > { %v570_v14 = vsel %vm559_vm2, %v565_v13, 0  ;;  %v635_v15 = vsel %vm633_vm3, %v629_v12, 0 }
 0x191   : > { %1674 = vmatpush3.bf16.xpose.msra.mxu1 %v570_v14  ;;  %1680 = vmatpush3.bf16.msra.mxu0 %v635_v15 }
 0x192   : > { %1691 = vmatprep.subr.bf16.mxu0 %v1994_v0  ;;  %1685 = vmatprep.subr.bf16.mxu1 %v1994_v0 }
 0x198   : > { %1676 = vmatmul.mubr.msk.bf16.vlgmr.msra.gmra.mrb[4].mxu1 %vm559_vm2, %v2198_v10 }
 0x199   : > { %1687 = vmatprep.mubr.msk.bf16.mxu1 %vm1995_vm1, %v1994_v0  ;;  %1686 = vmatpush3.bf16.msra.mxu1 %v684_v28 }
 0x19a   : > { %1697 = vmatprep.subr.bf16.mxu1 %v1994_v0 }
 0x26b   : > { %v606_v16 = vpop.f32.mrb[4].mxu1 }
 0x26c   : > { %v612_v17 = vmul.f32 0.35355338, %v606_v16  ;;  %v1677_v18 = vpop.f32.mrb[5].mxu1 }
 0x26d   : > { %v609_v19 = vpop.f32.mrb[6].mxu1 }
 0x26e   : > { %v1678_v20 = vpop.f32.mrb[7].mxu1  ;;  %v613_v21 = vsel %vm559_vm2, %v612_v17, -inf }
 0x26f   : > { %614 = vmax.xlane.f32.xlu0 %v613_v21 }
 0x285   : > { %794 = vrot.lane.b32.xlu0 %v2198_v10, %s1998_s25  ;;  %s1455_s25 = scalar_lea.sflag [#allocation8], %s2215_s28 }
 0x2fc   : > { %v615_v22 = vpop.xlane.xlu0 %614 }
 0x2fd   : > { %v616_v23 = vsub.f32 %v612_v17, %v615_v22 }
 0x2ff   : > { %v617_v24 = vmul.f32 1.442695, %v616_v23 }
 0x300   : > { %v795_v38 = vpop.permute.xlu0 %794 }
 0x301   : > { %1843 = vpow2.f32 %v617_v24  ;;  %v800_v43 = vsel %vm633_vm3, %v795_v38, 0 }
 0x30b   : > { %v1844_v25 = vpop.eup %1843 }
 0x30c   : > { %v619_v26 = vsel %vm559_vm2, %v1844_v25, 0.0 }
 0x30d   : > { %620 = vadd.xlane.f32.xlu1 %v619_v26 }
 0x31e   : > { %730 = vrot.lane.b32.xlu1 %v2198_v10, %s1999_s27  ;;  %s2003_s27 = smov 48  }
 0x322   : > { %728 = vrot.lane.b32.xlu1 %v2198_v10, %s2000_s15  ;;  %s2004_s15 = smov 72  }
 0x39a   : > { %v621_v29 = vpop.xlane.xlu1 %620 }
 0x39b   : > { %1845 = vrcp.f32 %v621_v29 }
 0x39e   : > { %v731_v33 = vpop.permute.xlu1 %730 }
 0x39f   : > { %v736_v36 = vsel %vm559_vm2, %v731_v33, 0 }
 0x3a2   : > { %v729_v37 = vpop.permute.xlu1 %728 }
 0x3a5   : > { %v1846_v30 = vpop.eup %1845 }
 0x3a6   : > { %v623_v32 = vmul.f32 %v1846_v30, %v1844_v25 }
 0x3a8   : > { %v627_v34 = vpack.c.bf16 %v623_v32, %v623_v32  ;;  %v625_v35 = vadd.f32 %v624_v31, %v623_v32 }
 0x3aa   : > { %1682 = vmatmul.mubr.msk.bf16.vlgmr.msra.gmra.mrb[0].mxu0 %vm559_vm2, %v627_v34  ;;  %626 = vst.msk [vmem:[%s2220_s26] sm:$0xff] %vm559_vm2, %v625_v35 }
 0x3ab   : > { %1692 = vmatpush3.bf16.xpose.msra.mxu0 %v736_v36  ;;  %1693 = vmatprep.mubr.msk.bf16.mxu0 %vm1995_vm1, %v1994_v0 }
 0x3ac   : > { %1703 = vmatprep.subr.bf16.mxu0 %v1994_v0 }
 0x3b1   : > { %v790_v4 = vld [vmem:[%s2220_s26] sm:$0xff] }
 0x3b2   : > { %1694 = vmatmul.mubr.msk.bf16.vlgmr.msra.gmra.mrb[4].mxu0 %vm559_vm2, %v729_v37 }
 0x3b3   : > { %1705 = vmatprep.mubr.msk.bf16.mxu0 %vm1995_vm1, %v1994_v0  ;;  %1704 = vmatpush3.bf16.msra.mxu0 %v849_v11 }
 0x3b4   : > { %1715 = vmatprep.subr.bf16.mxu0 %v1994_v0 }
 0x47d   : > { %v671_v39 = vpop.f32.mrb[0].mxu0 }
 0x47e   : > { %v678_v40 = vpack.c.bf16 %v671_v39, %v671_v39  ;;  %v1683_v41 = vpop.f32.mrb[1].mxu0 }
 0x47f   : > { %v674_v42 = vpop.f32.mrb[2].mxu0 }
 0x480   : > { %v1684_v44 = vpop.f32.mrb[3].mxu0  ;;  %1688 = vmatmul.mubr.msk.bf16.vlgmr.msra.gmra.mrb[8].mxu1 %vm559_vm2, %v678_v40 }
 0x481   : > { %1698 = vmatpush3.bf16.msra.mxu1 %v800_v43  ;;  %1699 = vmatprep.mubr.msk.bf16.mxu1 %vm1995_vm1, %v1994_v0 }
 0x482   : > { %1709 = vmatprep.subr.bf16.mxu1 %v1994_v0 }
 0x485   : > { %v772_v45 = vpop.f32.mrb[4].mxu0 }
 0x486   : > { %v778_v46 = vmul.f32 0.35355338, %v772_v45  ;;  %v1695_v47 = vpop.f32.mrb[5].mxu0  ;;  %v1009_v45 = vld [vmem:[%s2446_s3 + $0x8] sm:$0xf] }
 0x487   : > { %v775_v48 = vpop.f32.mrb[6].mxu0 }
 0x488   : > { %v1696_v49 = vpop.f32.mrb[7].mxu0  ;;  %v779_v50 = vsel %vm559_vm2, %v778_v46, -inf }
 0x489   : > { %780 = vmax.xlane.f32.xlu1 %v779_v50 }
 0x516   : > { %v781_v51 = vpop.xlane.xlu1 %780 }
 0x517   : > { %v782_v52 = vsub.f32 %v778_v46, %v781_v51  ;;  %v1014_v46 = vsel %vm633_vm3, %v1009_v45, 0 }
 0x519   : > { %v783_v53 = vmul.f32 1.442695, %v782_v52 }
 0x51b   : > { %1847 = vpow2.f32 %v783_v53 }
 0x525   : > { %v1848_v54 = vpop.eup %1847 }
 0x526   : > { %v785_v55 = vsel %vm559_vm2, %v1848_v54, 0.0 }
 0x527   : > { %786 = vadd.xlane.f32.xlu0 %v785_v55 }
 0x53d   : > { %895 = vrot.lane.b32.xlu0 %v2198_v10, %s2001_s20 }
 0x541   : > { %893 = vrot.lane.b32.xlu0 %v2198_v10, %s2002_s19  ;;  %s2006_s19 = smov 40  }
 0x553   : > { %v720_v57 = vpop.f32.mrb[8].mxu1 }
 0x554   : > { %v726_v58 = vadd.f32 %v720_v57, %v677_v56  ;;  %v1689_v59 = vpop.f32.mrb[9].mxu1 }
 0x555   : > { %v723_v60 = vpop.f32.mrb[10].mxu1 }
 0x556   : > { %727 = vst.msk [vmem:[#allocation2] sm:$0xff] %vm515_vm0, %v726_v58  ;;  %v1690_v61 = vpop.f32.mrb[11].mxu1 }
 0x55d   : > { %v842_v30 = vld [vmem:[#allocation2] sm:$0xff] }
 0x5b4   : > { %v787_v62 = vpop.xlane.xlu0 %786 }
 0x5b5   : > { %1849 = vrcp.f32 %v787_v62 }
 0x5b8   : > { %v896_v2 = vpop.permute.xlu0 %895 }
 0x5b9   : > { %v901_v7 = vsel %vm559_vm2, %v896_v2, 0 }
 0x5bc   : > { %v894_v8 = vpop.permute.xlu0 %893 }
 0x5bf   : > { %v1850_v63 = vpop.eup %1849 }
 0x5c0   : > { %v789_v1 = vmul.f32 %v1850_v63, %v1848_v54  ;;  %v1174_v63 = vld [vmem:[%s2446_s3 + $0xc] sm:$0xf] }
 0x5c2   : > { %v793_v5 = vpack.c.bf16 %v789_v1, %v789_v1  ;;  %v791_v6 = vadd.f32 %v790_v4, %v789_v1  ;;  %v1179_v1 = vsel %vm633_vm3, %v1174_v63, 0 }
 0x5c4   : > { %1700 = vmatmul.mubr.msk.bf16.vlgmr.msra.gmra.mrb[12].mxu1 %vm559_vm2, %v793_v5  ;;  %792 = vst.msk [vmem:[%s2220_s26] sm:$0xff] %vm559_vm2, %v791_v6 }
 0x5c5   : > { %1710 = vmatpush3.bf16.xpose.msra.mxu1 %v901_v7  ;;  %1711 = vmatprep.mubr.msk.bf16.mxu1 %vm1995_vm1, %v1994_v0 }
 0x5c6   : > { %1721 = vmatprep.subr.bf16.mxu1 %v1994_v0 }
 0x5cb   : > { %v955_v40 = vld [vmem:[%s2220_s26] sm:$0xff] }
 0x5cc   : > { %1712 = vmatmul.mubr.msk.bf16.vlgmr.msra.gmra.mrb[16].mxu1 %vm559_vm2, %v894_v8 }
 0x5cd   : > { %1723 = vmatprep.mubr.msk.bf16.mxu1 %vm1995_vm1, %v1994_v0  ;;  %1722 = vmatpush3.bf16.msra.mxu1 %v1014_v46 }
 0x5ce   : > { %1733 = vmatprep.subr.bf16.mxu1 %v1994_v0 }
 0x697   : > { %v836_v12 = vpop.f32.mrb[12].mxu1 }
 0x698   : > { %v843_v13 = vpack.c.bf16 %v836_v12, %v836_v12  ;;  %v1701_v14 = vpop.f32.mrb[13].mxu1 }
 0x699   : > { %v839_v15 = vpop.f32.mrb[14].mxu1 }
 0x69a   : > { %v1702_v16 = vpop.f32.mrb[15].mxu1  ;;  %1706 = vmatmul.mubr.msk.bf16.vlgmr.msra.gmra.mrb[8].mxu0 %vm559_vm2, %v843_v13 }
 0x69b   : > { %1717 = vmatprep.mubr.msk.bf16.mxu0 %vm1995_vm1, %v1994_v0 }
 0x69f   : > { %v937_v17 = vpop.f32.mrb[16].mxu1 }
 0x6a0   : > { %v943_v18 = vmul.f32 0.35355338, %v937_v17  ;;  %v1713_v19 = vpop.f32.mrb[17].mxu1 }
 0x6a1   : > { %v940_v20 = vpop.f32.mrb[18].mxu1 }
 0x6a2   : > { %v1714_v21 = vpop.f32.mrb[19].mxu1  ;;  %v944_v22 = vsel %vm559_vm2, %v943_v18, -inf }
 0x6a3   : > { %945 = vmax.xlane.f32.xlu1 %v944_v22 }
 0x6b4   : > { %959 = vrot.lane.b32.xlu1 %v2198_v10, %s2003_s27  ;;  %s1891_s27 = scalar_lea.vmem %s1482_s24, 128 }
 0x6b5   : > { %p1892_p6 = scmp.ne.s32.totalorder %s1482_s24, %s1891_s27 }
 0x6b7   : > { %p1893_p10 = pnand %p1892_p6, %p2480_p9 }
 0x6b8   : > { %1060 = vrot.lane.b32.xlu1 %v2198_v10, %s2004_s15  ;;  %s2007_s15 = smov [#allocation7]  }
 0x6b9   : > { %p1894_p12 = pneg %p1893_p10  ;;  %s1895_s21 = sshll.u32 %s2007_s15, 4  ;;  %s1896_s21 = int_to_ptr.vmem [resolvable:$false] %s1895_s21 }
 0x6ba   : > { %s1897_s0 = scalar_lea.vmem %s1896_s21, 256  ;;  %p1898_p2 = scmp.lt.s32.totalorder %s1482_s24, %s1896_s21 }
 0x6bb   : > { %p1899_p3 = scmp.lt.s32.totalorder %s1897_s0, %s1891_s27 }
 0x6bc   : > { %1058 = vrot.lane.b32.xlu1 %v2198_v10, %s2005_s22  ;;  %s2466_s22 = sshll.u32 %s2105_s17, 7 }
 0x6bd   : > { %p1900_p4 = por %p1899_p3, %p1898_p2 }
 0x6bf   : > { %p1901_p7 = pnand %p1900_p4, %p1894_p12 }
 0x730   : > { %v946_v23 = vpop.xlane.xlu1 %945 }
 0x731   : > { %v947_v24 = vsub.f32 %v943_v18, %v946_v23 }
 0x733   : > { %v948_v25 = vmul.f32 1.442695, %v947_v24 }
 0x734   : > { %v960_v26 = vpop.permute.xlu1 %959 }
 0x735   : > { %1851 = vpow2.f32 %v948_v25  ;;  %v965_v27 = vsel %vm633_vm3, %v960_v26, 0 }
 0x736   : > { %1716 = vmatpush3.bf16.msra.mxu0 %v965_v27 }
 0x737   : > { %1727 = vmatprep.subr.bf16.mxu0 %v1994_v0 }
 0x738   : > { %v1061_v39 = vpop.permute.xlu1 %1060 }
 0x739   : > { %v1066_v43 = vsel %vm559_vm2, %v1061_v39, 0 }
 0x73c   : > { %v1059_v44 = vpop.permute.xlu1 %1058 }
 0x73f   : > { %v1852_v28 = vpop.eup %1851 }
 0x740   : > { %v950_v29 = vsel %vm559_vm2, %v1852_v28, 0.0 }
 0x741   : > { %951 = vadd.xlane.f32.xlu0 %v950_v29 }
 0x76d   : > { %v885_v31 = vpop.f32.mrb[8].mxu0 }
 0x76e   : > { %v891_v32 = vadd.f32 %v885_v31, %v842_v30  ;;  %v1707_v33 = vpop.f32.mrb[9].mxu0  ;;  %v1609_v30 = vld [vmem:[%s2447_s4] ss:$0 sm:$0xff] }
 0x76f   : > { %v888_v34 = vpop.f32.mrb[10].mxu0 }
 0x770   : > { %892 = vst.msk [vmem:[#allocation2] sm:$0xff] %vm515_vm0, %v891_v32  ;;  %v1708_v35 = vpop.f32.mrb[11].mxu0 }
 0x777   : > { %v1007_v2 = vld [vmem:[#allocation2] sm:$0xff] }
 0x7ce   : > { %v952_v36 = vpop.xlane.xlu0 %951 }
 0x7cf   : > { %1853 = vrcp.f32 %v952_v36 }
 0x7d9   : > { %v1854_v37 = vpop.eup %1853 }
 0x7da   : > { %v954_v38 = vmul.f32 %v1854_v37, %v1852_v28 }
 0x7dc   : > { %v958_v41 = vpack.c.bf16 %v954_v38, %v954_v38  ;;  %v956_v42 = vadd.f32 %v955_v40, %v954_v38  ;;  %v1837_v40 = vld [vmem:[#allocation3] sm:$0xff]  }
 0x7de   : > { %1718 = vmatmul.mubr.msk.bf16.vlgmr.msra.gmra.mrb[12].mxu0 %vm559_vm2, %v958_v41  ;;  %957 = vst.msk [vmem:[%s2220_s26] sm:$0xff] %vm559_vm2, %v956_v42  ;;  %v1838_v41 = vld [vmem:[#allocation3 + $0x8] sm:$0xff]   ;;  %v1840_v42 = vld [vmem:[%s2450_s7 + $0x8] sm:$0xff]  }
 0x7df   : > { %1728 = vmatpush3.bf16.xpose.msra.mxu0 %v1066_v43  ;;  %1729 = vmatprep.mubr.msk.bf16.mxu0 %vm1995_vm1, %v1994_v0 }
 0x7e0   : > { %1739 = vmatprep.subr.bf16.mxu0 %v1994_v0 }
 0x7e5   : > { %v1120_v14 = vld [vmem:[%s2220_s26] sm:$0xff] }
 0x7e6   : > { %1730 = vmatmul.mubr.msk.bf16.vlgmr.msra.gmra.mrb[16].mxu0 %vm559_vm2, %v1059_v44 }
 0x7e7   : > { %1741 = vmatprep.mubr.msk.bf16.mxu0 %vm1995_vm1, %v1994_v0  ;;  %1740 = vmatpush3.bf16.msra.mxu0 %v1179_v1 }
 0x7e8   : > { %1753 = vmatprep.subr.bf16.mxu0 %v1994_v0 }
 0x8b1   : > { %v1001_v47 = vpop.f32.mrb[12].mxu0 }
 0x8b2   : > { %v1008_v48 = vpack.c.bf16 %v1001_v47, %v1001_v47  ;;  %v1719_v49 = vpop.f32.mrb[13].mxu0  ;;  %v1610_v47 = vld [vmem:[%s2452_s9] ss:$0 sm:$0xff] }
 0x8b3   : > { %v1004_v50 = vpop.f32.mrb[14].mxu0  ;;  %v1611_v49 = vld [vmem:[%s2453_s10] ss:$0 sm:$0xff] }
 0x8b4   : > { %v1720_v51 = vpop.f32.mrb[15].mxu0  ;;  %1724 = vmatmul.mubr.msk.bf16.vlgmr.msra.gmra.mrb[20].mxu1 %vm559_vm2, %v1008_v48 }
 0x8b5   : > { %1735 = vmatprep.mubr.msk.bf16.mxu1 %vm1995_vm1, %v1994_v0 }
 0x8b9   : > { %v1102_v52 = vpop.f32.mrb[16].mxu0 }
 0x8ba   : > { %v1108_v53 = vmul.f32 0.35355338, %v1102_v52  ;;  %v1731_v54 = vpop.f32.mrb[17].mxu0 }
 0x8bb   : > { %v1105_v55 = vpop.f32.mrb[18].mxu0  ;;  %v1842_v54 = vld [vmem:[%s2450_s7 + $0x18] sm:$0xff]  }
 0x8bc   : > { %v1732_v56 = vpop.f32.mrb[19].mxu0  ;;  %v1109_v57 = vsel %vm559_vm2, %v1108_v53, -inf  ;;  %v1612_v55 = vld [vmem:[%s2449_s6] ss:$0 sm:$0xff] }
 0x8bd   : > { %1110 = vmax.xlane.f32.xlu1 %v1109_v57 }
 0x94a   : > { %v1111_v58 = vpop.xlane.xlu1 %1110 }
 0x94b   : > { %v1112_v59 = vsub.f32 %v1108_v53, %v1111_v58  ;;  %v1841_v53 = vld [vmem:[%s2450_s7 + $0x10] sm:$0xff]  }
 0x94d   : > { %v1113_v60 = vmul.f32 1.442695, %v1112_v59 }
 0x94f   : > { %1855 = vpow2.f32 %v1113_v60 }
 0x959   : > { %v1856_v61 = vpop.eup %1855 }
 0x95a   : > { %v1115_v62 = vsel %vm559_vm2, %v1856_v61, 0.0 }
 0x95b   : > { %1116 = vadd.xlane.f32.xlu0 %v1115_v62 }
 0x971   : > { %1124 = vrot.lane.b32.xlu0 %v2198_v10, %s2006_s19  ;;  %s2365_s19 = scalar_lea.hbm %s2457_s14, %s2466_s22 }
 0x987   : > { %v1050_v4 = vpop.f32.mrb[20].mxu1 }
 0x988   : > { %v1056_v5 = vadd.f32 %v1050_v4, %v1007_v2  ;;  %v1725_v6 = vpop.f32.mrb[21].mxu1 }
 0x989   : > { %v1053_v7 = vpop.f32.mrb[22].mxu1 }
 0x98a   : > { %1057 = vst.msk [vmem:[#allocation2] sm:$0xff] %vm515_vm0, %v1056_v5  ;;  %v1726_v10 = vpop.f32.mrb[23].mxu1 }
 0x991   : > { %v1172_v24 = vld [vmem:[#allocation2] sm:$0xff] }
 0x9e8   : > { %v1117_v8 = vpop.xlane.xlu0 %1116 }
 0x9e9   : > { %1857 = vrcp.f32 %v1117_v8 }
 0x9ec   : > { %v1125_v9 = vpop.permute.xlu0 %1124 }
 0x9ed   : > { %v1130_v11 = vsel %vm633_vm3, %v1125_v9, 0 }
 0x9ee   : > { %1734 = vmatpush3.bf16.msra.mxu1 %v1130_v11 }
 0x9ef   : > { %1745 = vmatprep.subr.bf16.mxu1 %v1994_v0 }
 0x9f3   : > { %v1858_v12 = vpop.eup %1857 }
 0x9f4   : > { %v1119_v13 = vmul.f32 %v1858_v12, %v1856_v61 }
 0x9f6   : > { %v1123_v15 = vpack.c.bf16 %v1119_v13, %v1119_v13  ;;  %v1121_v16 = vadd.f32 %v1120_v14, %v1119_v13 }
 0x9f8   : > { %1736 = vmatmul.mubr.msk.bf16.vlgmr.msra.gmra.mrb[24].mxu1 %vm559_vm2, %v1123_v15  ;;  %1122 = vst.msk [vmem:[%s2220_s26] sm:$0xff] %vm559_vm2, %v1121_v16 }
 0x9f9   : > { %1749 = vmatprep.mubr.msk.bf16.mxu1 %vm1995_vm1, %v1994_v0  ;;  %1746 = vmatpush3.bf16.msra.mxu1 %v1837_v40 }
 0x9fa   : > { %1747 = vmatprep.subr.bf16.mxu1 %v1994_v0 }
 0x9fd   : > { %1748 = vmatpush3.bf16.msra.mxu1 %v1838_v41 }
 0x9ff   : > { %v1223_v17 = vld [vmem:[%s2220_s26] sm:$0xff] }
 0xa00   : > { %v1224_v18 = vmul.f32 0.25, %v1223_v17 }
 0xa02   : > { %1225 = vst.msk [vmem:[%s2220_s26] sm:$0xff] %vm559_vm2, %v1224_v18 }
 0xacb   : > { %v1166_v19 = vpop.f32.mrb[24].mxu1 }
 0xacc   : > { %v1173_v20 = vpack.c.bf16 %v1166_v19, %v1166_v19  ;;  %v1737_v21 = vpop.f32.mrb[25].mxu1 }
 0xacd   : > { %v1169_v22 = vpop.f32.mrb[26].mxu1 }
 0xace   : > { %v1738_v23 = vpop.f32.mrb[27].mxu1  ;;  %1742 = vmatmul.mubr.msk.bf16.vlgmr.msra.gmra.mrb[20].mxu0 %vm559_vm2, %v1173_v20 }
 0xacf   : > { %1761 = vmatprep.mubr.msk.bf16.mxu0 %vm1995_vm1, %v1994_v0 }
 0xba1   : > { %v1215_v25 = vpop.f32.mrb[20].mxu0 }
 0xba2   : > { %v1221_v26 = vadd.f32 %v1215_v25, %v1172_v24  ;;  %v1743_v27 = vpop.f32.mrb[21].mxu0 }
 0xba3   : > { %v1218_v28 = vpop.f32.mrb[22].mxu0 }
 0xba4   : > { %1222 = vst.msk [vmem:[#allocation2] sm:$0xff] %vm515_vm0, %v1221_v26  ;;  %v1744_v29 = vpop.f32.mrb[23].mxu0 }
 0xbab   : > { %v1226_v31 = vld [vmem:[#allocation2] sm:$0xff] }
 0xbac   : > { %v1234_v32 = vadd.f32 %v1609_v30, %v1226_v31 }
 0xbae   : > { %v1235_v33 = vadd.f32 %v1234_v32, %v2186_v3  ;;  %v1839_v3 = vld [vmem:[%s2450_s7] sm:$0xff]  }
 0xbaf   : > { %1754 = vmatpush3.bf16.msra.mxu0 %v1839_v3 }
 0xbb0   : > { %v1238_v34 = vsel %vm515_vm0, %v1235_v33, 0.0  ;;  %1755 = vmatprep.subr.bf16.mxu0 %v1994_v0 }
 0xbb1   : > { %1239 = vadd.xlane.f32.xlu0 %v1238_v34 }
 0xbb3   : > { %1756 = vmatpush3.bf16.msra.mxu0 %v1840_v42 }
 0xbb4   : > { %1757 = vmatprep.subr.bf16.mxu0 %v1994_v0 }
 0xbb7   : > { %1758 = vmatpush3.bf16.msra.mxu0 %v1841_v53 }
 0xbb8   : > { %1759 = vmatprep.subr.bf16.mxu0 %v1994_v0  ;;  %v1616_v0 = vld [vmem:[%s2451_s8] ss:$0 sm:$0xff] }
 0xbbb   : > { %1760 = vmatpush3.bf16.msra.mxu0 %v1842_v54 }
 0xc3e   : > { %v1240_v35 = vpop.xlane.xlu0 %1239 }
 0xc3f   : > { %v1242_v36 = vmul.f32 0.03125, %v1240_v35 }
 0xc41   : > { %v1243_v37 = vsub.f32 %v1235_v33, %v1242_v36 }
 0xc43   : > { %v1244_v38 = vmul.f32 %v1243_v37, %v1243_v37 }
 0xc45   : > { %v1245_v39 = vsel %vm515_vm0, %v1244_v38, 0.0 }
 0xc46   : > { %1246 = vadd.xlane.f32.xlu1 %v1245_v39 }
 0xcd3   : > { %v1247_v43 = vpop.xlane.xlu1 %1246 }
 0xcd4   : > { %v1248_v44 = vmul.f32 0.03125, %v1247_v43 }
 0xcd6   : > { %v1249_v45 = vadd.f32 1e-05, %v1248_v44 }
 0xcd8   : > { %1859 = vrsqrt.f32 %v1249_v45 }
 0xce2   : > { %v1860_v46 = vpop.eup %1859 }
 0xce3   : > { %v1251_v48 = vmul.f32 %v1860_v46, %v1243_v37 }
 0xce5   : > { %v1258_v50 = vmul.f32 %v1610_v47, %v1251_v48 }
 0xce7   : > { %v1265_v51 = vadd.f32 %v1611_v49, %v1258_v50 }
 0xce9   : > { %v1266_v52 = vpack.c.bf16 %v1265_v51, %v1265_v51 }
 0xceb   : > { %1750 = vmatmul.mubr.msk.bf16.vlgmr.msra.gmra.mrb[28].mxu1 %vm515_vm0, %v1266_v52 }
 0xdbe   : > { %v1327_v56 = vpop.f32.mrb[28].mxu1 }
 0xdbf   : > { %v1328_v57 = vadd.f32 %v1612_v55, %v1327_v56  ;;  %v1751_v58 = vpop.f32.mrb[29].mxu1 }
 0xdc0   : > { %v1330_v59 = vpop.f32.mrb[30].mxu1 }
 0xdc1   : > { %v1333_v60 = vmax.f32 %v1328_v57, 0.0  ;;  %v1752_v61 = vpop.f32.mrb[31].mxu1 }
 0xdc3   : > { %v1334_v62 = vpack.c.bf16 %v1333_v60, %v1333_v60 }
 0xdc5   : > { %1762 = vmatmul.mubr.msk.bf16.vlgmr.msra.gmra.mrb[24].mxu0 %vm1374_vm4, %v1334_v62 }
 0xe98   : > { %v1412_v63 = vpop.f32.mrb[24].mxu0 }
 0xe99   : > { %v1413_v1 = vadd.f32 %v1616_v0, %v1412_v63  ;;  %v1763_v2 = vpop.f32.mrb[25].mxu0 }
 0xe9a   : > { %v1415_v4 = vpop.f32.mrb[26].mxu0 }
 0xe9b   : > { %v1764_v5 = vpop.f32.mrb[27].mxu0  ;;  %v1418_v6 = vadd.f32 %v1413_v1, %v1265_v51 }
 0xe9d   : > { %v1421_v7 = vsel %vm515_vm0, %v1418_v6, 0.0 }
 0xe9e   : > { %1422 = vadd.xlane.f32.xlu1 %v1421_v7 }
 0xf2b   : > { %v1423_v10 = vpop.xlane.xlu1 %1422 }
 0xf2c   : > { %v1424_v8 = vmul.f32 0.03125, %v1423_v10 }
 0xf2e   : > { %v1425_v9 = vsub.f32 %v1418_v6, %v1424_v8 }
 0xf30   : > { %v1426_v11 = vmul.f32 %v1425_v9, %v1425_v9 }
 0xf32   : > { %v1427_v12 = vsel %vm515_vm0, %v1426_v11, 0.0 }
 0xf33   : > { %1428 = vadd.xlane.f32.xlu1 %v1427_v12 }
 0xf34   : > { %1904 = shalt.err (!%p1901_p7)
}
 0xf35   : > { %s1905_s26 = scalar_lea.hbm %s2365_s19, 128  ;;  %s1909_s15 = scalar_lea.hbm %s2457_s14, 256 }
 0xf36   : > { %p1906_p8 = scmp.ne.s32.totalorder %s2365_s19, %s1905_s26  ;;  %p1910_p1 = scmp.lt.u32.totalorder %s2365_s19, %s2457_s14 }
 0xf37   : > { %p1911_p0 = scmp.lt.u32.totalorder %s1909_s15, %s1905_s26  ;;  %p1913_p6 = scmp.lt.u32.totalorder %s1905_s26, %s2365_s19 }
 0xf38   : > { %p1907_p11 = pnand %p1906_p8, %p2480_p9 }
 0xf39   : > { %p1912_p5 = por %p1911_p0, %p1910_p1 }
 0xf3a   : > { %p1908_p13 = pneg %p1907_p11 }
 0xf3b   : > { %p1914_p10 = por %p1913_p6, %p1912_p5 }
 0xf3d   : > { %p1915_p12 = pnand %p1914_p10, %p1908_p13 }
 0xf3f   : > { %1918 = shalt.err (!%p1915_p12)
}
 0xf40   : > { %1770 = dma.vmem_to_hbm [thread:$0]  (%p2480_p9), %s1482_s24, 128, %s2365_s19, %s1455_s25   ;;  %v1622_v17 = vld [vmem:[%s2454_s11] ss:$0 sm:$0xff] }
 0xf41   : > { %v1623_v19 = vld [vmem:[%s2455_s12] ss:$0 sm:$0xff]  ;;  %s2481_s18 = sshll.u32 %s2215_s28, 3  ;;  %s2482_s19 = sshll.u32 %s2105_s17, 7 }
 0xf42   : > { %s477_s20 = scalar_lea.vmem [#allocation6], %s2481_s18  ;;  %s2399_s21 = scalar_lea.hbm %s2456_s13, %s2482_s19 }
 0xf43   : > { %s1468_s15 = sshll.u32 %s477_s20, 4  ;;  %s1450_s0 = scalar_lea.sflag [#allocation5], %s2215_s28  ;;  %s2401_s15 = int_to_ptr.vmem [resolvable:$true] %s1468_s15 }
 0xf44   : > { %s1919_s22 = scalar_lea.vmem %s2401_s15, 128  ;;  %s2008_s27 = smov [#allocation6]  }
 0xf45   : > { %p1920_p2 = scmp.ne.s32.totalorder %s2401_s15, %s1919_s22  ;;  %s1923_s17 = sshll.u32 %s2008_s27, 4  ;;  %s1924_s17 = int_to_ptr.vmem [resolvable:$false] %s1923_s17 }
 0xf46   : > { %s1925_s26 = scalar_lea.vmem %s1924_s17, 256  ;;  %p1926_p7 = scmp.lt.s32.totalorder %s2401_s15, %s1924_s17 }
 0xf47   : > { %p1921_p3 = pnand %p1920_p2, %p2480_p9  ;;  %p1927_p8 = scmp.lt.s32.totalorder %s1925_s26, %s1919_s22 }
 0xf49   : > { %p1922_p4 = pneg %p1921_p3  ;;  %p1928_p11 = por %p1927_p8, %p1926_p7 }
 0xf4b   : > { %p1929_p13 = pnand %p1928_p11, %p1922_p4 }
 0xfc0   : > { %v1429_v13 = vpop.xlane.xlu1 %1428 }
 0xfc1   : > { %v1430_v14 = vmul.f32 0.03125, %v1429_v13 }
 0xfc3   : > { %v1431_v15 = vadd.f32 1e-05, %v1430_v14 }
 0xfc5   : > { %1861 = vrsqrt.f32 %v1431_v15 }
 0xfcf   : > { %v1862_v16 = vpop.eup %1861 }
 0xfd0   : > { %v1433_v18 = vmul.f32 %v1862_v16, %v1425_v9 }
 0xfd2   : > { %v1440_v20 = vmul.f32 %v1622_v17, %v1433_v18 }
 0xfd4   : > { %v1447_v21 = vadd.f32 %v1623_v19, %v1440_v20 }
 0xfd6   : > { %1448 = vst.msk [vmem:[%s477_s20] sm:$0xff] %vm515_vm0, %v1447_v21 }
 0xfd7   : > { %1932 = shalt.err (!%p1929_p13)
}
 0xfd8   : > { %s1933_s28 = scalar_lea.hbm %s2399_s21, 128  ;;  %s1937_s19 = scalar_lea.hbm %s2456_s13, 256 }
 0xfd9   : > { %p1934_p1 = scmp.ne.s32.totalorder %s2399_s21, %s1933_s28  ;;  %p1938_p6 = scmp.lt.u32.totalorder %s2399_s21, %s2456_s13 }
 0xfda   : > { %p1939_p10 = scmp.lt.u32.totalorder %s1937_s19, %s1933_s28  ;;  %p1941_p2 = scmp.lt.u32.totalorder %s1933_s28, %s2399_s21 }
 0xfdb   : > { %p1935_p0 = pnand %p1934_p1, %p2480_p9 }
 0xfdc   : > { %p1940_p12 = por %p1939_p10, %p1938_p6 }
 0xfdd   : > { %p1936_p5 = pneg %p1935_p0 }
 0xfde   : > { %p1942_p3 = por %p1941_p2, %p1940_p12 }
 0xfe0   : > { %p1943_p4 = pnand %p1942_p3, %p1936_p5 }
 0xfe2   : > { %1946 = shalt.err (!%p1943_p4)
}
 0xfe3   : > { %1769 = dma.vmem_to_hbm [thread:$0]  (%p2480_p9), %s2401_s15, 128, %s2399_s21, %s1450_s0  }
 0xfe4 PF: > { %s2483_s22 = sld [smem:[#allocation15_spill]]  ;;  %p1786_p7 = scmp.ge.s32.totalorder %s1989_s16, 2 }
 0xfe5   : > { %s1493_s27 = sand.u32 1, %s1977_s29  }
 0xfe6   : > { %s1494_s17 = scalar_lea.sflag [#allocation5], %s1493_s27 }
 0xfea   : > { %p2484_p8 = scmp.ne.s32.totalorder %s2483_s22, 0 }
 0xfec   : > { %p1778_p11 = pnand %p1786_p7, %p2484_p8 }
 0xfee   : > { %1968 = dma.done.wait (!%p1778_p11), %s1494_s17, 128  }
 0xfef   : > { %1970 = vsyncadd (!%p1778_p11), %s1494_s17, 4294967168  ;;  %s1503_s26 = scalar_lea.sflag [#allocation8], %s1493_s27 }
 0xff0   : > { %1972 = dma.done.wait (!%p1778_p11), %s1503_s26, 128  }
 0xff1   : > { %1974 = vsyncadd (!%p1778_p11), %s1503_s26, 4294967168  ;;  %s2485_s16 = sld [smem:[#allocation13_spill]]  ;;  %s2486_s23 = sld [smem:[#allocation12_spill]] }
 0xff2   : > { %s2487_s15 = sld [smem:[#allocation14_spill]]  ;;  %s2488_s29 = smov %s1981_s30 }
 0xff7   : > { %p29_p9 = scmp.ge.s32.totalorder %s2485_s16, 4   ;;  %s2489_s30 = smov %s2486_s23 }
 0xff9   :  { %31 = sbr.rel (!%p29_p9) target bundleno = 8 (0x8), region = 129 }
0x1000   :  { %1508 = vsyncpa [#allocation4], 1 }
0x1001   :  { %1510 = vsyncpa [#allocation4 + $0x1], 1 }
0x1002   :  { %1511 = vsyncpa [#allocation5], 1 }
0x1003   :  { %1513 = vsyncpa [#allocation5 + $0x1], 1 }
0x1004   :  { %1514 = vsyncpa [#allocation8], 1 }
0x1005   :  { %1516 = vsyncpa [#allocation8 + $0x1], 1 }

</bundles_post_ra>
